<compile_context>
chip_gen: v6e
topology: v6e:2x2x1
jax: 0.10.0
libtpu: 0.0.40
codegen_flags: <defaults>
</compile_context>

<pallas_src>
import functools

import jax
import jax.numpy as jnp
import numpy as np
from jax import lax
from jax.experimental import pallas as pl
from jax.experimental.pallas import tpu as pltpu


LANE = 128
SUBLANE = 8
B_TILE_MAX = 16          # images per grid step for large batches


def _round_up(v, m):
    return ((v + m - 1) // m) * m


def _pick_batch_tile(n):
    """Amortize per-step overhead but keep >= 2 grid steps for megacore."""
    if n >= 2 * B_TILE_MAX:
        return B_TILE_MAX
    return max(1, (n + 1) // 2)


# ---------------------------------------------------------------------------
# Fused kernel: conv1 (one big matmul) + tanh + conv2 (9 contiguous-slice
# matmuls accumulated into the VMEM output block)
# ---------------------------------------------------------------------------
def _net_fused_kernel(xcol_ref, w1_ref, b1_ref, w2_ref, b2_ref, o_ref, h_ref,
                      *, b_tile, m1, m2, wo1, kh2, kw2):
    # xcol_ref : (b_tile, m1, K1P)           im2col'd conv1 input (K padded)
    # w1_ref   : (K1P, C1P)                  conv1 weight slab (zero padded)
    # b1_ref   : (1, C1P)
    # w2_ref   : (kh2*kw2, C1P, C2P)         conv2 tap weights (zero padded)
    # b2_ref   : (1, C2P)
    # o_ref    : (b_tile, m2, C2P)           "wide" conv2 output (lane dense)
    # h_ref    : (b_tile, m1+pad, C1P)       VMEM scratch for the activation
    k1p = w1_ref.shape[0]
    c1p = w1_ref.shape[1]
    c2p = w2_ref.shape[-1]
    m1_pad = h_ref.shape[1]

    # ---- conv1: ONE (b_tile*m1, K1P) x (K1P, C1P) MXU matmul + bias + tanh -
    x = xcol_ref[...].reshape(b_tile * m1, k1p)
    h = jnp.dot(x, w1_ref[...], preferred_element_type=jnp.float32)
    h = jnp.tanh(h + b1_ref[...])
    # Padded output channels stay exactly zero (w/b pad cols are 0, tanh(0)=0)
    h_ref[:, :m1, :] = h.reshape(b_tile, m1, c1p)
    # Zero the extra rows: they only feed discarded wide-output columns, but
    # keep them deterministic (8 rows -> negligible).
    h_ref[:, m1:, :] = jnp.zeros((b_tile, m1_pad - m1, c1p), jnp.float32)

    # ---- conv2: kh2*kw2 accumulated matmuls over CONTIGUOUS row slices -----
    # "Wide" trick: compute HO2 x WO1 outputs per image; tap (i, j) reads the
    # contiguous rows [i*WO1 + j, i*WO1 + j + m2) of the flat h, so there is
    # no sublane/lane relayout copy per tap.  The extra WO1 - WO2 columns per
    # output row are sliced away in the wrapper.
    for t in range(kh2 * kw2):
        i, j = divmod(t, kw2)
        off = i * wo1 + j
        patch = h_ref[:, off:off + m2, :].reshape(b_tile * m2, c1p)
        contrib = jnp.dot(patch, w2_ref[t], preferred_element_type=jnp.float32)
        if t == 0:
            o_ref[...] = (contrib + b2_ref[...]).reshape(b_tile, m2, c2p)
        else:
            o_ref[...] += contrib.reshape(b_tile, m2, c2p)


# ---------------------------------------------------------------------------
# Net: parameter construction + forward
# ---------------------------------------------------------------------------
def init_net_params(key, n_channels):
    """Deterministic init mimicking nn.Conv2d default (uniform +-1/sqrt(fan_in))."""
    k1, k2, k3, k4 = jax.random.split(key, 4)

    # conv1: PyTorch weight (100, n_channels, 5, 5) -> HWIO (5, 5, n_channels, 100)
    fan1 = n_channels * 5 * 5
    bnd1 = 1.0 / np.sqrt(fan1)
    w1 = jax.random.uniform(k1, (5, 5, n_channels, 100), jnp.float32, -bnd1, bnd1)
    b1 = jax.random.uniform(k2, (1, 100), jnp.float32, -bnd1, bnd1)

    # conv2: PyTorch weight (60, 100, 3, 3) -> HWIO (3, 3, 100, 60)
    fan2 = 100 * 3 * 3
    bnd2 = 1.0 / np.sqrt(fan2)
    w2 = jax.random.uniform(k3, (3, 3, 100, 60), jnp.float32, -bnd2, bnd2)
    b2 = jax.random.uniform(k4, (1, 60), jnp.float32, -bnd2, bnd2)

    return dict(w1=w1, b1=b1, w2=w2, b2=b2)


@jax.jit
def net_forward(params, x_nchw):
    """Forward pass matching Net.forward. Input/output are NCHW like PyTorch."""
    w1, b1, w2, b2 = params["w1"], params["b1"], params["w2"], params["b2"]
    N, _, H, W = x_nchw.shape
    KH1, KW1, Cin, C1 = w1.shape             # (5, 5, Cin, 100)
    KH2, KW2, _, C2 = w2.shape               # (3, 3, 100, 60)
    HO1, WO1 = H - KH1 + 1, W - KW1 + 1      # conv1 output spatial (12, 12)
    HO2, WO2 = HO1 - KH2 + 1, WO1 - KW2 + 1  # conv2 output spatial (10, 10)

    K1 = KH1 * KW1 * Cin                     # conv1 contraction dim (100)
    K1P = _round_up(K1, LANE)                # -> 128
    C1P = _round_up(C1, LANE)                # 100 -> 128 (lane-dense h)
    C2P = _round_up(C2, LANE)                # 60  -> 128 (lane-dense output)

    M1 = HO1 * WO1                           # 144 conv1 rows per image
    M2 = HO2 * WO1                           # 120 "wide" conv2 rows per image
    # tap offsets reach (KH2-1)*WO1 + (KW2-1) past M2 -> pad h rows (144->152)
    M1P = _round_up((KH2 - 1) * WO1 + (KW2 - 1) + M2, SUBLANE)

    b_tile = _pick_batch_tile(N)
    n_pad = _round_up(N, b_tile)
    grid_n = n_pad // b_tile

    # --- XLA-side prep: NCHW->NHWC, conv1 im2col, zero-padded weight slabs ---
    # TODO(synk): for a net this small the XLA im2col / epilogue can rival the
    # kernel; kept in XLA since a lane-sparse 4-channel in-kernel gather would
    # cost more than this one-off prep.
    x = jnp.transpose(x_nchw, (0, 2, 3, 1)).astype(jnp.float32)   # (N,H,W,Cin)
    cols = [x[:, i:i + HO1, j:j + WO1, :]
            for i in range(KH1) for j in range(KW1)]
    x_col = jnp.concatenate(cols, axis=-1).reshape(N, M1, K1)
    x_col = jnp.pad(x_col, ((0, n_pad - N), (0, 0), (0, K1P - K1)))

    w1p = jnp.zeros((K1P, C1P), jnp.float32).at[:K1, :C1].set(w1.reshape(K1, C1))
    b1p = jnp.zeros((1, C1P), jnp.float32).at[:, :C1].set(b1)
    w2p = jnp.zeros((KH2 * KW2, C1P, C2P), jnp.float32).at[:, :C1, :C2].set(
        w2.reshape(KH2 * KW2, C1, C2))
    b2p = jnp.zeros((1, C2P), jnp.float32).at[:, :C2].set(b2)

    kernel = functools.partial(_net_fused_kernel, b_tile=b_tile, m1=M1, m2=M2,
                               wo1=WO1, kh2=KH2, kw2=KW2)

    out_pad = pl.pallas_call(
        kernel,
        out_shape=jax.ShapeDtypeStruct((n_pad, M2, C2P), jnp.float32),
        grid_spec=pltpu.PrefetchScalarGridSpec(
            num_scalar_prefetch=0,
            grid=(grid_n,),
            in_specs=[
                pl.BlockSpec((b_tile, M1, K1P), lambda n: (n, 0, 0)),
                pl.BlockSpec((K1P, C1P), lambda n: (0, 0)),
                pl.BlockSpec((1, C1P), lambda n: (0, 0)),
                pl.BlockSpec((KH2 * KW2, C1P, C2P), lambda n: (0, 0, 0)),
                pl.BlockSpec((1, C2P), lambda n: (0, 0)),
            ],
            out_specs=pl.BlockSpec((b_tile, M2, C2P), lambda n: (n, 0, 0)),
            scratch_shapes=[pltpu.VMEM((b_tile, M1P, C1P), jnp.float32)],
        ),
        compiler_params=pltpu.CompilerParams(
            dimension_semantics=("parallel",),
            vmem_limit_bytes=32 * 1024 * 1024),
    )(x_col, w1p, b1p, w2p, b2p)

    # Drop batch pad, wide columns and channel pad; back to NCHW.
    out = out_pad[:N].reshape(N, HO2, WO1, C2P)[:, :, :WO2, :C2]
    return jnp.transpose(out, (0, 3, 1, 2))


# ---------------------------------------------------------------------------
# Pure-JAX reference (for correctness check)
# ---------------------------------------------------------------------------
def net_forward_ref(params, x_nchw):
    dn = ("NHWC", "HWIO", "NHWC")
    x = jnp.transpose(x_nchw, (0, 2, 3, 1))
    h = lax.conv_general_dilated(x, params["w1"], (1, 1), "VALID",
                                 dimension_numbers=dn,
                                 precision=lax.Precision.HIGHEST)
    h = jnp.tanh(h + params["b1"][None, None])
    y = lax.conv_general_dilated(h, params["w2"], (1, 1), "VALID",
                                 dimension_numbers=dn,
                                 precision=lax.Precision.HIGHEST)
    y = y + params["b2"][None, None]
    return jnp.transpose(y, (0, 3, 1, 2))


if __name__ == "__main__":
    key = jax.random.PRNGKey(0)
    k_param, k_x = jax.random.split(key)

    n_channels, height, width = 4, 16, 16
    batch = 2

    params = init_net_params(k_param, n_channels)
    x = jax.random.normal(k_x, (batch, n_channels, height, width), jnp.float32)

    out = jax.block_until_ready(net_forward(params, x))

    # Expected shape: conv1 (5x5, valid): 16->12 ; conv2 (3x3, valid): 12->10
    assert out.shape == (batch, 60, 10, 10), out.shape

    ref = jax.block_until_ready(net_forward_ref(params, x))
    if not np.allclose(np.asarray(out), np.asarray(ref), atol=1e-4, rtol=1e-4):
        raise AssertionError("Pallas kernel output mismatch vs reference")

    print("KERNEL_OK")
</pallas_src>

<mosaic_0001>
module attributes {stable_mosaic.version = 11 : i64} {
  func.func @_net_fused_kernel(%arg0: i32, %arg1: memref<1x144x128xf32, #tpu.memory_space<vmem>>, %arg2: memref<128x128xf32, #tpu.memory_space<vmem>>, %arg3: memref<1x128xf32, #tpu.memory_space<vmem>>, %arg4: memref<9x128x128xf32, #tpu.memory_space<vmem>>, %arg5: memref<1x128xf32, #tpu.memory_space<vmem>>, %arg6: memref<1x120x128xf32, #tpu.memory_space<vmem>>, %arg7: memref<1x152x128xf32, #tpu.memory_space<vmem>>) attributes {dimension_semantics = [#tpu.dimension_semantics<parallel>], iteration_bounds = array<i64: 2>, scalar_prefetch = 0 : i64, scratch_operands = 1 : i64, tpu.core_type = #tpu.core_type<tc>, window_params = [{transform_indices = @transform_0, window_bounds = array<i64: 1, 144, 128>}, {pipeline_mode = #tpu.pipeline_mode<synchronous>, transform_indices = @transform_1, window_bounds = array<i64: 128, 128>}, {pipeline_mode = #tpu.pipeline_mode<synchronous>, transform_indices = @transform_2, window_bounds = array<i64: 1, 128>}, {pipeline_mode = #tpu.pipeline_mode<synchronous>, transform_indices = @transform_3, window_bounds = array<i64: 9, 128, 128>}, {pipeline_mode = #tpu.pipeline_mode<synchronous>, transform_indices = @transform_4, window_bounds = array<i64: 1, 128>}, {transform_indices = @transform_5, window_bounds = array<i64: 1, 120, 128>}]} {
    %c0 = arith.constant 0 : index
    %c0_0 = arith.constant 0 : index
    %c0_1 = arith.constant 0 : index
    %0 = vector.load %arg1[%c0, %c0_0, %c0_1] : memref<1x144x128xf32, #tpu.memory_space<vmem>>, vector<1x144x128xf32>
    %1 = vector.shape_cast %0 : vector<1x144x128xf32> to vector<144x128xf32>
    %c0_2 = arith.constant 0 : index
    %c0_3 = arith.constant 0 : index
    %2 = vector.load %arg2[%c0_2, %c0_3] : memref<128x128xf32, #tpu.memory_space<vmem>>, vector<128x128xf32>
    %cst = arith.constant dense<0.000000e+00> : vector<144x128xf32>
    %3 = tpu.matmul %1, %2, %cst {dimension_numbers = #tpu.dot_dimension_numbers<[1], [0], [0], [1], [0, 0, 1, 1], [], []>} : vector<144x128xf32>, vector<128x128xf32>, vector<144x128xf32> -> vector<144x128xf32>
    %c0_4 = arith.constant 0 : index
    %c0_5 = arith.constant 0 : index
    %4 = vector.load %arg3[%c0_4, %c0_5] : memref<1x128xf32, #tpu.memory_space<vmem>>, vector<1x128xf32>
    %5 = vector.broadcast %4 : vector<1x128xf32> to vector<144x128xf32>
    %6 = arith.addf %3, %5 : vector<144x128xf32>
    %7 = math.tanh %6 : vector<144x128xf32>
    %8 = vector.shape_cast %7 : vector<144x128xf32> to vector<1x144x128xf32>
    %c0_6 = arith.constant 0 : index
    %c0_7 = arith.constant 0 : index
    %c0_8 = arith.constant 0 : index
    %9 = vector.load %arg7[%c0_6, %c0_7, %c0_8] : memref<1x152x128xf32, #tpu.memory_space<vmem>>, vector<1x144x128xf32>
    tpu.vector_store %arg7[%c0_6, %c0_7, %c0_8], %8 {strides = array<i32>} : memref<1x152x128xf32, #tpu.memory_space<vmem>>, vector<1x144x128xf32>,
    %cst_9 = arith.constant 0.000000e+00 : f32
    %10 = vector.broadcast %cst_9 : f32 to vector<1x8x128xf32>
    %c0_10 = arith.constant 0 : index
    %c144 = arith.constant 144 : index
    %c0_11 = arith.constant 0 : index
    %11 = vector.load %arg7[%c0_10, %c144, %c0_11] : memref<1x152x128xf32, #tpu.memory_space<vmem>>, vector<1x8x128xf32>
    tpu.vector_store %arg7[%c0_10, %c144, %c0_11], %10 {strides = array<i32>} : memref<1x152x128xf32, #tpu.memory_space<vmem>>, vector<1x8x128xf32>,
    %c0_12 = arith.constant 0 : index
    %c0_13 = arith.constant 0 : index
    %c0_14 = arith.constant 0 : index
    %12 = vector.load %arg7[%c0_12, %c0_13, %c0_14] : memref<1x152x128xf32, #tpu.memory_space<vmem>>, vector<1x120x128xf32>
    %13 = vector.shape_cast %12 : vector<1x120x128xf32> to vector<120x128xf32>
    %c0_15 = arith.constant 0 : index
    %c0_16 = arith.constant 0 : index
    %c0_17 = arith.constant 0 : index
    %14 = vector.load %arg4[%c0_15, %c0_16, %c0_17] : memref<9x128x128xf32, #tpu.memory_space<vmem>>, vector<1x128x128xf32>
    %15 = vector.shape_cast %14 : vector<1x128x128xf32> to vector<128x128xf32>
    %cst_18 = arith.constant dense<0.000000e+00> : vector<120x128xf32>
    %16 = tpu.matmul %13, %15, %cst_18 {dimension_numbers = #tpu.dot_dimension_numbers<[1], [0], [0], [1], [0, 0, 1, 1], [], []>} : vector<120x128xf32>, vector<128x128xf32>, vector<120x128xf32> -> vector<120x128xf32>
    %c0_19 = arith.constant 0 : index
    %c0_20 = arith.constant 0 : index
    %17 = vector.load %arg5[%c0_19, %c0_20] : memref<1x128xf32, #tpu.memory_space<vmem>>, vector<1x128xf32>
    %18 = vector.broadcast %17 : vector<1x128xf32> to vector<120x128xf32>
    %19 = arith.addf %16, %18 : vector<120x128xf32>
    %20 = vector.shape_cast %19 : vector<120x128xf32> to vector<1x120x128xf32>
    %c0_21 = arith.constant 0 : index
    %c0_22 = arith.constant 0 : index
    %c0_23 = arith.constant 0 : index
    %21 = vector.load %arg6[%c0_21, %c0_22, %c0_23] : memref<1x120x128xf32, #tpu.memory_space<vmem>>, vector<1x120x128xf32>
    tpu.vector_store %arg6[%c0_21, %c0_22, %c0_23], %20 {strides = array<i32>} : memref<1x120x128xf32, #tpu.memory_space<vmem>>, vector<1x120x128xf32>,
    %c0_24 = arith.constant 0 : index
    %c1 = arith.constant 1 : index
    %c0_25 = arith.constant 0 : index
    %22 = vector.load %arg7[%c0_24, %c1, %c0_25] : memref<1x152x128xf32, #tpu.memory_space<vmem>>, vector<1x120x128xf32>
    %23 = vector.shape_cast %22 : vector<1x120x128xf32> to vector<120x128xf32>
    %c1_26 = arith.constant 1 : index
    %c0_27 = arith.constant 0 : index
    %c0_28 = arith.constant 0 : index
    %24 = vector.load %arg4[%c1_26, %c0_27, %c0_28] : memref<9x128x128xf32, #tpu.memory_space<vmem>>, vector<1x128x128xf32>
    %25 = vector.shape_cast %24 : vector<1x128x128xf32> to vector<128x128xf32>
    %cst_29 = arith.constant dense<0.000000e+00> : vector<120x128xf32>
    %26 = tpu.matmul %23, %25, %cst_29 {dimension_numbers = #tpu.dot_dimension_numbers<[1], [0], [0], [1], [0, 0, 1, 1], [], []>} : vector<120x128xf32>, vector<128x128xf32>, vector<120x128xf32> -> vector<120x128xf32>
    %c0_30 = arith.constant 0 : index
    %c0_31 = arith.constant 0 : index
    %c0_32 = arith.constant 0 : index
    %27 = vector.load %arg6[%c0_30, %c0_31, %c0_32] : memref<1x120x128xf32, #tpu.memory_space<vmem>>, vector<1x120x128xf32>
    %28 = vector.shape_cast %26 : vector<120x128xf32> to vector<1x120x128xf32>
    %29 = arith.addf %27, %28 : vector<1x120x128xf32>
    %c0_33 = arith.constant 0 : index
    %c0_34 = arith.constant 0 : index
    %c0_35 = arith.constant 0 : index
    %30 = vector.load %arg6[%c0_33, %c0_34, %c0_35] : memref<1x120x128xf32, #tpu.memory_space<vmem>>, vector<1x120x128xf32>
    tpu.vector_store %arg6[%c0_33, %c0_34, %c0_35], %29 {strides = array<i32>} : memref<1x120x128xf32, #tpu.memory_space<vmem>>, vector<1x120x128xf32>,
    %c0_36 = arith.constant 0 : index
    %c2 = arith.constant 2 : index
    %c0_37 = arith.constant 0 : index
    %31 = vector.load %arg7[%c0_36, %c2, %c0_37] : memref<1x152x128xf32, #tpu.memory_space<vmem>>, vector<1x120x128xf32>
    %32 = vector.shape_cast %31 : vector<1x120x128xf32> to vector<120x128xf32>
    %c2_38 = arith.constant 2 : index
    %c0_39 = arith.constant 0 : index
    %c0_40 = arith.constant 0 : index
    %33 = vector.load %arg4[%c2_38, %c0_39, %c0_40] : memref<9x128x128xf32, #tpu.memory_space<vmem>>, vector<1x128x128xf32>
    %34 = vector.shape_cast %33 : vector<1x128x128xf32> to vector<128x128xf32>
    %cst_41 = arith.constant dense<0.000000e+00> : vector<120x128xf32>
    %35 = tpu.matmul %32, %34, %cst_41 {dimension_numbers = #tpu.dot_dimension_numbers<[1], [0], [0], [1], [0, 0, 1, 1], [], []>} : vector<120x128xf32>, vector<128x128xf32>, vector<120x128xf32> -> vector<120x128xf32>
    %c0_42 = arith.constant 0 : index
    %c0_43 = arith.constant 0 : index
    %c0_44 = arith.constant 0 : index
    %36 = vector.load %arg6[%c0_42, %c0_43, %c0_44] : memref<1x120x128xf32, #tpu.memory_space<vmem>>, vector<1x120x128xf32>
    %37 = vector.shape_cast %35 : vector<120x128xf32> to vector<1x120x128xf32>
    %38 = arith.addf %36, %37 : vector<1x120x128xf32>
    %c0_45 = arith.constant 0 : index
    %c0_46 = arith.constant 0 : index
    %c0_47 = arith.constant 0 : index
    %39 = vector.load %arg6[%c0_45, %c0_46, %c0_47] : memref<1x120x128xf32, #tpu.memory_space<vmem>>, vector<1x120x128xf32>
    tpu.vector_store %arg6[%c0_45, %c0_46, %c0_47], %38 {strides = array<i32>} : memref<1x120x128xf32, #tpu.memory_space<vmem>>, vector<1x120x128xf32>,
    %c0_48 = arith.constant 0 : index
    %c12 = arith.constant 12 : index
    %c0_49 = arith.constant 0 : index
    %40 = vector.load %arg7[%c0_48, %c12, %c0_49] : memref<1x152x128xf32, #tpu.memory_space<vmem>>, vector<1x120x128xf32>
    %41 = vector.shape_cast %40 : vector<1x120x128xf32> to vector<120x128xf32>
    %c3 = arith.constant 3 : index
    %c0_50 = arith.constant 0 : index
    %c0_51 = arith.constant 0 : index
    %42 = vector.load %arg4[%c3, %c0_50, %c0_51] : memref<9x128x128xf32, #tpu.memory_space<vmem>>, vector<1x128x128xf32>
    %43 = vector.shape_cast %42 : vector<1x128x128xf32> to vector<128x128xf32>
    %cst_52 = arith.constant dense<0.000000e+00> : vector<120x128xf32>
    %44 = tpu.matmul %41, %43, %cst_52 {dimension_numbers = #tpu.dot_dimension_numbers<[1], [0], [0], [1], [0, 0, 1, 1], [], []>} : vector<120x128xf32>, vector<128x128xf32>, vector<120x128xf32> -> vector<120x128xf32>
    %c0_53 = arith.constant 0 : index
    %c0_54 = arith.constant 0 : index
    %c0_55 = arith.constant 0 : index
    %45 = vector.load %arg6[%c0_53, %c0_54, %c0_55] : memref<1x120x128xf32, #tpu.memory_space<vmem>>, vector<1x120x128xf32>
    %46 = vector.shape_cast %44 : vector<120x128xf32> to vector<1x120x128xf32>
    %47 = arith.addf %45, %46 : vector<1x120x128xf32>
    %c0_56 = arith.constant 0 : index
    %c0_57 = arith.constant 0 : index
    %c0_58 = arith.constant 0 : index
    %48 = vector.load %arg6[%c0_56, %c0_57, %c0_58] : memref<1x120x128xf32, #tpu.memory_space<vmem>>, vector<1x120x128xf32>
    tpu.vector_store %arg6[%c0_56, %c0_57, %c0_58], %47 {strides = array<i32>} : memref<1x120x128xf32, #tpu.memory_space<vmem>>, vector<1x120x128xf32>,
    %c0_59 = arith.constant 0 : index
    %c13 = arith.constant 13 : index
    %c0_60 = arith.constant 0 : index
    %49 = vector.load %arg7[%c0_59, %c13, %c0_60] : memref<1x152x128xf32, #tpu.memory_space<vmem>>, vector<1x120x128xf32>
    %50 = vector.shape_cast %49 : vector<1x120x128xf32> to vector<120x128xf32>
    %c4 = arith.constant 4 : index
    %c0_61 = arith.constant 0 : index
    %c0_62 = arith.constant 0 : index
    %51 = vector.load %arg4[%c4, %c0_61, %c0_62] : memref<9x128x128xf32, #tpu.memory_space<vmem>>, vector<1x128x128xf32>
    %52 = vector.shape_cast %51 : vector<1x128x128xf32> to vector<128x128xf32>
    %cst_63 = arith.constant dense<0.000000e+00> : vector<120x128xf32>
    %53 = tpu.matmul %50, %52, %cst_63 {dimension_numbers = #tpu.dot_dimension_numbers<[1], [0], [0], [1], [0, 0, 1, 1], [], []>} : vector<120x128xf32>, vector<128x128xf32>, vector<120x128xf32> -> vector<120x128xf32>
    %c0_64 = arith.constant 0 : index
    %c0_65 = arith.constant 0 : index
    %c0_66 = arith.constant 0 : index
    %54 = vector.load %arg6[%c0_64, %c0_65, %c0_66] : memref<1x120x128xf32, #tpu.memory_space<vmem>>, vector<1x120x128xf32>
    %55 = vector.shape_cast %53 : vector<120x128xf32> to vector<1x120x128xf32>
    %56 = arith.addf %54, %55 : vector<1x120x128xf32>
    %c0_67 = arith.constant 0 : index
    %c0_68 = arith.constant 0 : index
    %c0_69 = arith.constant 0 : index
    %57 = vector.load %arg6[%c0_67, %c0_68, %c0_69] : memref<1x120x128xf32, #tpu.memory_space<vmem>>, vector<1x120x128xf32>
    tpu.vector_store %arg6[%c0_67, %c0_68, %c0_69], %56 {strides = array<i32>} : memref<1x120x128xf32, #tpu.memory_space<vmem>>, vector<1x120x128xf32>,
    %c0_70 = arith.constant 0 : index
    %c14 = arith.constant 14 : index
    %c0_71 = arith.constant 0 : index
    %58 = vector.load %arg7[%c0_70, %c14, %c0_71] : memref<1x152x128xf32, #tpu.memory_space<vmem>>, vector<1x120x128xf32>
    %59 = vector.shape_cast %58 : vector<1x120x128xf32> to vector<120x128xf32>
    %c5 = arith.constant 5 : index
    %c0_72 = arith.constant 0 : index
    %c0_73 = arith.constant 0 : index
    %60 = vector.load %arg4[%c5, %c0_72, %c0_73] : memref<9x128x128xf32, #tpu.memory_space<vmem>>, vector<1x128x128xf32>
    %61 = vector.shape_cast %60 : vector<1x128x128xf32> to vector<128x128xf32>
    %cst_74 = arith.constant dense<0.000000e+00> : vector<120x128xf32>
    %62 = tpu.matmul %59, %61, %cst_74 {dimension_numbers = #tpu.dot_dimension_numbers<[1], [0], [0], [1], [0, 0, 1, 1], [], []>} : vector<120x128xf32>, vector<128x128xf32>, vector<120x128xf32> -> vector<120x128xf32>
    %c0_75 = arith.constant 0 : index
    %c0_76 = arith.constant 0 : index
    %c0_77 = arith.constant 0 : index
    %63 = vector.load %arg6[%c0_75, %c0_76, %c0_77] : memref<1x120x128xf32, #tpu.memory_space<vmem>>, vector<1x120x128xf32>
    %64 = vector.shape_cast %62 : vector<120x128xf32> to vector<1x120x128xf32>
    %65 = arith.addf %63, %64 : vector<1x120x128xf32>
    %c0_78 = arith.constant 0 : index
    %c0_79 = arith.constant 0 : index
    %c0_80 = arith.constant 0 : index
    %66 = vector.load %arg6[%c0_78, %c0_79, %c0_80] : memref<1x120x128xf32, #tpu.memory_space<vmem>>, vector<1x120x128xf32>
    tpu.vector_store %arg6[%c0_78, %c0_79, %c0_80], %65 {strides = array<i32>} : memref<1x120x128xf32, #tpu.memory_space<vmem>>, vector<1x120x128xf32>,
    %c0_81 = arith.constant 0 : index
    %c24 = arith.constant 24 : index
    %c0_82 = arith.constant 0 : index
    %67 = vector.load %arg7[%c0_81, %c24, %c0_82] : memref<1x152x128xf32, #tpu.memory_space<vmem>>, vector<1x120x128xf32>
    %68 = vector.shape_cast %67 : vector<1x120x128xf32> to vector<120x128xf32>
    %c6 = arith.constant 6 : index
    %c0_83 = arith.constant 0 : index
    %c0_84 = arith.constant 0 : index
    %69 = vector.load %arg4[%c6, %c0_83, %c0_84] : memref<9x128x128xf32, #tpu.memory_space<vmem>>, vector<1x128x128xf32>
    %70 = vector.shape_cast %69 : vector<1x128x128xf32> to vector<128x128xf32>
    %cst_85 = arith.constant dense<0.000000e+00> : vector<120x128xf32>
    %71 = tpu.matmul %68, %70, %cst_85 {dimension_numbers = #tpu.dot_dimension_numbers<[1], [0], [0], [1], [0, 0, 1, 1], [], []>} : vector<120x128xf32>, vector<128x128xf32>, vector<120x128xf32> -> vector<120x128xf32>
    %c0_86 = arith.constant 0 : index
    %c0_87 = arith.constant 0 : index
    %c0_88 = arith.constant 0 : index
    %72 = vector.load %arg6[%c0_86, %c0_87, %c0_88] : memref<1x120x128xf32, #tpu.memory_space<vmem>>, vector<1x120x128xf32>
    %73 = vector.shape_cast %71 : vector<120x128xf32> to vector<1x120x128xf32>
    %74 = arith.addf %72, %73 : vector<1x120x128xf32>
    %c0_89 = arith.constant 0 : index
    %c0_90 = arith.constant 0 : index
    %c0_91 = arith.constant 0 : index
    %75 = vector.load %arg6[%c0_89, %c0_90, %c0_91] : memref<1x120x128xf32, #tpu.memory_space<vmem>>, vector<1x120x128xf32>
    tpu.vector_store %arg6[%c0_89, %c0_90, %c0_91], %74 {strides = array<i32>} : memref<1x120x128xf32, #tpu.memory_space<vmem>>, vector<1x120x128xf32>,
    %c0_92 = arith.constant 0 : index
    %c25 = arith.constant 25 : index
    %c0_93 = arith.constant 0 : index
    %76 = vector.load %arg7[%c0_92, %c25, %c0_93] : memref<1x152x128xf32, #tpu.memory_space<vmem>>, vector<1x120x128xf32>
    %77 = vector.shape_cast %76 : vector<1x120x128xf32> to vector<120x128xf32>
    %c7 = arith.constant 7 : index
    %c0_94 = arith.constant 0 : index
    %c0_95 = arith.constant 0 : index
    %78 = vector.load %arg4[%c7, %c0_94, %c0_95] : memref<9x128x128xf32, #tpu.memory_space<vmem>>, vector<1x128x128xf32>
    %79 = vector.shape_cast %78 : vector<1x128x128xf32> to vector<128x128xf32>
    %cst_96 = arith.constant dense<0.000000e+00> : vector<120x128xf32>
    %80 = tpu.matmul %77, %79, %cst_96 {dimension_numbers = #tpu.dot_dimension_numbers<[1], [0], [0], [1], [0, 0, 1, 1], [], []>} : vector<120x128xf32>, vector<128x128xf32>, vector<120x128xf32> -> vector<120x128xf32>
    %c0_97 = arith.constant 0 : index
    %c0_98 = arith.constant 0 : index
    %c0_99 = arith.constant 0 : index
    %81 = vector.load %arg6[%c0_97, %c0_98, %c0_99] : memref<1x120x128xf32, #tpu.memory_space<vmem>>, vector<1x120x128xf32>
    %82 = vector.shape_cast %80 : vector<120x128xf32> to vector<1x120x128xf32>
    %83 = arith.addf %81, %82 : vector<1x120x128xf32>
    %c0_100 = arith.constant 0 : index
    %c0_101 = arith.constant 0 : index
    %c0_102 = arith.constant 0 : index
    %84 = vector.load %arg6[%c0_100, %c0_101, %c0_102] : memref<1x120x128xf32, #tpu.memory_space<vmem>>, vector<1x120x128xf32>
    tpu.vector_store %arg6[%c0_100, %c0_101, %c0_102], %83 {strides = array<i32>} : memref<1x120x128xf32, #tpu.memory_space<vmem>>, vector<1x120x128xf32>,
    %c0_103 = arith.constant 0 : index
    %c26 = arith.constant 26 : index
    %c0_104 = arith.constant 0 : index
    %85 = vector.load %arg7[%c0_103, %c26, %c0_104] : memref<1x152x128xf32, #tpu.memory_space<vmem>>, vector<1x120x128xf32>
    %86 = vector.shape_cast %85 : vector<1x120x128xf32> to vector<120x128xf32>
    %c8 = arith.constant 8 : index
    %c0_105 = arith.constant 0 : index
    %c0_106 = arith.constant 0 : index
    %87 = vector.load %arg4[%c8, %c0_105, %c0_106] : memref<9x128x128xf32, #tpu.memory_space<vmem>>, vector<1x128x128xf32>
    %88 = vector.shape_cast %87 : vector<1x128x128xf32> to vector<128x128xf32>
    %cst_107 = arith.constant dense<0.000000e+00> : vector<120x128xf32>
    %89 = tpu.matmul %86, %88, %cst_107 {dimension_numbers = #tpu.dot_dimension_numbers<[1], [0], [0], [1], [0, 0, 1, 1], [], []>} : vector<120x128xf32>, vector<128x128xf32>, vector<120x128xf32> -> vector<120x128xf32>
    %c0_108 = arith.constant 0 : index
    %c0_109 = arith.constant 0 : index
    %c0_110 = arith.constant 0 : index
    %90 = vector.load %arg6[%c0_108, %c0_109, %c0_110] : memref<1x120x128xf32, #tpu.memory_space<vmem>>, vector<1x120x128xf32>
    %91 = vector.shape_cast %89 : vector<120x128xf32> to vector<1x120x128xf32>
    %92 = arith.addf %90, %91 : vector<1x120x128xf32>
    %c0_111 = arith.constant 0 : index
    %c0_112 = arith.constant 0 : index
    %c0_113 = arith.constant 0 : index
    %93 = vector.load %arg6[%c0_111, %c0_112, %c0_113] : memref<1x120x128xf32, #tpu.memory_space<vmem>>, vector<1x120x128xf32>
    tpu.vector_store %arg6[%c0_111, %c0_112, %c0_113], %92 {strides = array<i32>} : memref<1x120x128xf32, #tpu.memory_space<vmem>>, vector<1x120x128xf32>,
    return
  }
  func.func @transform_0(%arg0: i32) -> (i32, i32, i32) {
    %c0_i32 = arith.constant 0 : i32
    %c0_i32_0 = arith.constant 0 : i32
    %c0_i32_1 = arith.constant 0 : i32
    return %arg0, %c0_i32, %c0_i32_0 : i32, i32, i32
  }
  func.func @transform_1(%arg0: i32) -> (i32, i32) {
    %c0_i32 = arith.constant 0 : i32
    %c0_i32_0 = arith.constant 0 : i32
    %c0_i32_1 = arith.constant 0 : i32
    return %c0_i32, %c0_i32_0 : i32, i32
  }
  func.func @transform_2(%arg0: i32) -> (i32, i32) {
    %c0_i32 = arith.constant 0 : i32
    %c0_i32_0 = arith.constant 0 : i32
    %c0_i32_1 = arith.constant 0 : i32
    return %c0_i32, %c0_i32_0 : i32, i32
  }
  func.func @transform_3(%arg0: i32) -> (i32, i32, i32) {
    %c0_i32 = arith.constant 0 : i32
    %c0_i32_0 = arith.constant 0 : i32
    %c0_i32_1 = arith.constant 0 : i32
    %c0_i32_2 = arith.constant 0 : i32
    return %c0_i32, %c0_i32_0, %c0_i32_1 : i32, i32, i32
  }
  func.func @transform_4(%arg0: i32) -> (i32, i32) {
    %c0_i32 = arith.constant 0 : i32
    %c0_i32_0 = arith.constant 0 : i32
    %c0_i32_1 = arith.constant 0 : i32
    return %c0_i32, %c0_i32_0 : i32, i32
  }
  func.func @transform_5(%arg0: i32) -> (i32, i32, i32) {
    %c0_i32 = arith.constant 0 : i32
    %c0_i32_0 = arith.constant 0 : i32
    %c0_i32_1 = arith.constant 0 : i32
    return %arg0, %c0_i32, %c0_i32_0 : i32, i32, i32
  }
}

</mosaic_0001>

<bundles_post_ra>
// kernel: net_forward.1
= control target key start
LH: loop header
LB: loop body
LE: loop exit
PB: predicated region body
PF: predicated region fallthrough
CT: control target
= control target key end

     0   :  { %s3768_s18 = smov 0   ;;  %s5044_s0 = inlined_call_operand.vmem [shape: f32[2,144,128], index: 0, kind: input, shape index: {}]   ;;  %s5045_s1 = inlined_call_operand.vmem [shape: f32[128,128], index: 1, kind: input, shape index: {}]   ;;  %s5046_s2 = inlined_call_operand.vmem [shape: f32[1,128], index: 2, kind: input, shape index: {}]   ;;  %s5047_s3 = inlined_call_operand.vmem [shape: f32[9,128,128], index: 3, kind: input, shape index: {}]   ;;  %s5048_s4 = inlined_call_operand.vmem [shape: f32[1,128], index: 4, kind: input, shape index: {}]   ;;  %s5049_s5 = inlined_call_operand.vmem [shape: f32[2,120,128], index: 5, kind: output, shape index: {}]  }
   0x1 LB: > { %s2442_s19 = sadd.s32 4294967295, %s3734_s18   ;;  %p2446_p0 = scmp.ge.s32.totalorder %s3734_s18, 1  ;;  %s3734_s18 = sphi %s3768_s18, %s15_s18  }
   0x2   : > { %p187_p1 = scmp.lt.s32.totalorder %s3734_s18, 3 }
   0x4   : > { %p188_p2 = pnand %p2446_p0, %p187_p1 }
   0x5   : > { %p215_p3 = scmp.lt.s32.totalorder (!%p188_p2), %s2442_s19, 1 }
   0x6   : > { %191 = sbr.rel (%p188_p2) target bundleno = 746 (0x2ea), region = 40 }
   0xb   : > { %v258_v0 = vld [vmem:[%s5045_s1 + $0x78] sm:$0xff]  ;;  %v257_v1 = vld [vmem:[%s5045_s1 + $0x70] sm:$0xff]  ;;  %v3736_v2 = vmov 0.0   ;;  %v256_v3 = vld [vmem:[%s5045_s1 + $0x68] sm:$0xff]  ;;  %s5051_s19 = smov (!%p215_p3, %s2442_s19), 1  ;;  %vm3737_vm0 = vmmov 0  }
   0xc   : > { %2894 = vmatprep.subr.mxu0 %v258_v0  ;;  %2953 = vmatprep.subr.mxu1 %v3736_v2  ;;  %457 = vst [vmem:[#allocation2 + $0x90] sm:$0xff] %v3736_v2  ;;  %v255_v4 = vld [vmem:[%s5045_s1 + $0x60] sm:$0xff]  ;;  %s3678_s28 = smul.u32 144, %s5051_s19  ;;  %v488_v5 = vld [vmem:[%s5047_s3 + $0x78] sm:$0xff]  ;;  %v487_v7 = vld [vmem:[%s5047_s3 + $0x70] sm:$0xff] }
   0xd   : > { %2895 = vmatpush3.msra.mxu0 %v258_v0  ;;  %v254_v6 = vld [vmem:[%s5045_s1 + $0x58] sm:$0xff]  ;;  %2954 = vmatpush3.msra.mxu1 %v488_v5  ;;  %v253_v9 = vld [vmem:[%s5045_s1 + $0x50] sm:$0xff]  ;;  %v486_v10 = vld [vmem:[%s5047_s3 + $0x68] sm:$0xff] }
   0xe   : > { %2896 = vmatprep.subr.mxu0 %v257_v1  ;;  %s3802_s10 = scalar_lea.vmem %s5044_s0, %s3678_s28  ;;  %2955 = vmatprep.subr.mxu1 %v3736_v2  ;;  %v252_v11 = vld [vmem:[%s5045_s1 + $0x48] sm:$0xff]  ;;  %v251_v12 = vld [vmem:[%s5045_s1 + $0x40] sm:$0xff]  ;;  %v250_v13 = vld [vmem:[%s5045_s1 + $0x38] sm:$0xff] }
   0xf   : > { %2897 = vmatpush3.msra.mxu0 %v257_v1  ;;  %v225_v8 = vld [vmem:[%s3802_s10] sm:$0xff]  ;;  %2956 = vmatpush3.msra.mxu1 %v487_v7  ;;  %v249_v14 = vld [vmem:[%s5045_s1 + $0x30] sm:$0xff]  ;;  %v248_v15 = vld [vmem:[%s5045_s1 + $0x28] sm:$0xff] }
  0x10   : > { %2898 = vmatprep.subr.mxu0 %v256_v3  ;;  %2926 = vmatprep.mubr.f32.mxu0 %v225_v8  ;;  %v247_v16 = vld [vmem:[%s5045_s1 + $0x20] sm:$0xff]  ;;  %v246_v17 = vld [vmem:[%s5045_s1 + $0x18] sm:$0xff]  ;;  %v245_v18 = vld [vmem:[%s5045_s1 + $0x10] sm:$0xff] }
  0x11   : > { %2899 = vmatpush3.msra.mxu0 %v256_v3  ;;  %2957 = vmatprep.subr.mxu1 %v3736_v2  ;;  %v244_v19 = vld [vmem:[%s5045_s1 + $0x8] sm:$0xff]  ;;  %v243_v20 = vld [vmem:[%s5045_s1] sm:$0xff]  ;;  %v227_v22 = vld [vmem:[%s3802_s10 + $0x10] sm:$0xff] }
  0x12   : > { %2900 = vmatprep.subr.mxu0 %v255_v4  ;;  %2958 = vmatpush3.msra.mxu1 %v486_v10  ;;  %v226_v21 = vld [vmem:[%s3802_s10 + $0x8] sm:$0xff]  ;;  %v2466_v23 = vld [vmem:[%s5047_s3 + $0xf8] sm:$0xff]  ;;  %v2465_v24 = vld [vmem:[%s5047_s3 + $0xf0] sm:$0xff] }
  0x13   : > { %2901 = vmatpush3.msra.mxu0 %v255_v4  ;;  %2959 = vmatprep.subr.mxu1 %v3736_v2  ;;  %v228_v25 = vld [vmem:[%s3802_s10 + $0x18] sm:$0xff]  ;;  %v229_v26 = vld [vmem:[%s3802_s10 + $0x20] sm:$0xff]  ;;  %v230_v27 = vld [vmem:[%s3802_s10 + $0x28] sm:$0xff] }
  0x14   : > { %2902 = vmatprep.subr.mxu0 %v254_v6  ;;  %v231_v28 = vld [vmem:[%s3802_s10 + $0x30] sm:$0xff]  ;;  %v232_v29 = vld [vmem:[%s3802_s10 + $0x38] sm:$0xff]  ;;  %v233_v30 = vld [vmem:[%s3802_s10 + $0x40] sm:$0xff]  ;;  %2985 = vmatprep.mubr.msk.f32.mxu1 %vm3737_vm0, %v3736_v2 }
  0x15   : > { %2903 = vmatpush3.msra.mxu0 %v254_v6  ;;  %v234_v31 = vld [vmem:[%s3802_s10 + $0x48] sm:$0xff]  ;;  %v235_v32 = vld [vmem:[%s3802_s10 + $0x50] sm:$0xff]  ;;  %v236_v33 = vld [vmem:[%s3802_s10 + $0x58] sm:$0xff] }
  0x16   : > { %2904 = vmatprep.subr.mxu0 %v253_v9  ;;  %v237_v34 = vld [vmem:[%s3802_s10 + $0x60] sm:$0xff]  ;;  %v238_v35 = vld [vmem:[%s3802_s10 + $0x68] sm:$0xff]  ;;  %v239_v36 = vld [vmem:[%s3802_s10 + $0x70] sm:$0xff] }
  0x17   : > { %2905 = vmatpush3.msra.mxu0 %v253_v9  ;;  %v240_v37 = vld [vmem:[%s3802_s10 + $0x78] sm:$0xff]  ;;  %v241_v38 = vld [vmem:[%s3802_s10 + $0x80] sm:$0xff]  ;;  %v242_v39 = vld [vmem:[%s3802_s10 + $0x88] sm:$0xff]  ;;  %s3679_s10 = smul.u32 120, %s5051_s19 }
  0x18   : > { %2906 = vmatprep.subr.mxu0 %v252_v11  ;;  %v485_v40 = vld [vmem:[%s5047_s3 + $0x60] sm:$0xff]  ;;  %v484_v41 = vld [vmem:[%s5047_s3 + $0x58] sm:$0xff]  ;;  %v483_v42 = vld [vmem:[%s5047_s3 + $0x50] sm:$0xff] }
  0x19   : > { %2907 = vmatpush3.msra.mxu0 %v252_v11  ;;  %2960 = vmatpush3.msra.mxu1 %v485_v40  ;;  %v2464_v43 = vld [vmem:[%s5047_s3 + $0xe8] sm:$0xff]  ;;  %v2463_v45 = vld [vmem:[%s5047_s3 + $0xe0] sm:$0xff]  ;;  %v2462_v47 = vld [vmem:[%s5047_s3 + $0xd8] sm:$0xff]  ;;  %s4988_s29 = scalar_lea.vmem %s5049_s5, %s3679_s10 }
  0x1a   : > { %2908 = vmatprep.subr.mxu0 %v251_v12  ;;  %2961 = vmatprep.subr.mxu1 %v3736_v2  ;;  %v482_v44 = vld [vmem:[%s5047_s3 + $0x48] sm:$0xff]  ;;  %v481_v46 = vld [vmem:[%s5047_s3 + $0x40] sm:$0xff]  ;;  %v480_v48 = vld [vmem:[%s5047_s3 + $0x38] sm:$0xff] }
  0x1b   : > { %2909 = vmatpush3.msra.mxu0 %v251_v12  ;;  %2962 = vmatpush3.msra.mxu1 %v484_v41  ;;  %v2461_v49 = vld [vmem:[%s5047_s3 + $0xd0] sm:$0xff]  ;;  %v2460_v51 = vld [vmem:[%s5047_s3 + $0xc8] sm:$0xff]  ;;  %v2459_v53 = vld [vmem:[%s5047_s3 + $0xc0] sm:$0xff] }
  0x1c   : > { %2910 = vmatprep.subr.mxu0 %v250_v13  ;;  %2963 = vmatprep.subr.mxu1 %v3736_v2  ;;  %v479_v50 = vld [vmem:[%s5047_s3 + $0x30] sm:$0xff]  ;;  %v478_v52 = vld [vmem:[%s5047_s3 + $0x28] sm:$0xff]  ;;  %v477_v54 = vld [vmem:[%s5047_s3 + $0x20] sm:$0xff] }
  0x1d   : > { %2911 = vmatpush3.msra.mxu0 %v250_v13  ;;  %2964 = vmatpush3.msra.mxu1 %v483_v42  ;;  %v2458_v55 = vld [vmem:[%s5047_s3 + $0xb8] sm:$0xff]  ;;  %v2457_v57 = vld [vmem:[%s5047_s3 + $0xb0] sm:$0xff]  ;;  %v2456_v59 = vld [vmem:[%s5047_s3 + $0xa8] sm:$0xff] }
  0x1e   : > { %2912 = vmatprep.subr.mxu0 %v249_v14  ;;  %2965 = vmatprep.subr.mxu1 %v3736_v2  ;;  %v476_v56 = vld [vmem:[%s5047_s3 + $0x18] sm:$0xff]  ;;  %v475_v58 = vld [vmem:[%s5047_s3 + $0x10] sm:$0xff]  ;;  %v474_v60 = vld [vmem:[%s5047_s3 + $0x8] sm:$0xff] }
  0x1f   : > { %2913 = vmatpush3.msra.mxu0 %v249_v14  ;;  %2966 = vmatpush3.msra.mxu1 %v482_v44  ;;  %v2455_v61 = vld [vmem:[%s5047_s3 + $0xa0] sm:$0xff]  ;;  %v2454_v63 = vld [vmem:[%s5047_s3 + $0x98] sm:$0xff]  ;;  %v2453_v0 = vld [vmem:[%s5047_s3 + $0x90] sm:$0xff] }
  0x20   : > { %2914 = vmatprep.subr.mxu0 %v248_v15  ;;  %2967 = vmatprep.subr.mxu1 %v3736_v2  ;;  %v473_v62 = vld [vmem:[%s5047_s3] sm:$0xff]  ;;  %v2452_v1 = vld [vmem:[%s5047_s3 + $0x88] sm:$0xff] }
  0x21   : > { %2915 = vmatpush3.msra.mxu0 %v248_v15  ;;  %2968 = vmatpush3.msra.mxu1 %v481_v46  ;;  %v2451_v3 = vld [vmem:[%s5047_s3 + $0x80] sm:$0xff] }
  0x22   : > { %2916 = vmatprep.subr.mxu0 %v247_v16  ;;  %2969 = vmatprep.subr.mxu1 %v3736_v2  ;;  %v3988_v4 = vld [vmem:[%s5046_s2] ss:$0 sm:$0xff] }
  0x23   : > { %2917 = vmatpush3.msra.mxu0 %v247_v16  ;;  %2970 = vmatpush3.msra.mxu1 %v480_v48 }
  0x24   : > { %2918 = vmatprep.subr.mxu0 %v246_v17  ;;  %2971 = vmatprep.subr.mxu1 %v3736_v2 }
  0x25   : > { %2919 = vmatpush3.msra.mxu0 %v246_v17  ;;  %2972 = vmatpush3.msra.mxu1 %v479_v50 }
  0x26   : > { %2920 = vmatprep.subr.mxu0 %v245_v18  ;;  %2973 = vmatprep.subr.mxu1 %v3736_v2 }
  0x27   : > { %2921 = vmatpush3.msra.mxu0 %v245_v18  ;;  %2974 = vmatpush3.msra.mxu1 %v478_v52  ;;  %v2497_v52 = vld [vmem:[%s5047_s3 + $0x1f0] sm:$0xff] }
  0x28   : > { %2922 = vmatprep.subr.mxu0 %v244_v19  ;;  %2975 = vmatprep.subr.mxu1 %v3736_v2 }
  0x29   : > { %2923 = vmatpush3.msra.mxu0 %v244_v19  ;;  %2976 = vmatpush3.msra.mxu1 %v477_v54 }
  0x2a   : > { %2924 = vmatprep.subr.mxu0 %v243_v20  ;;  %2977 = vmatprep.subr.mxu1 %v3736_v2 }
  0x2b   : > { %2925 = vmatpush3.msra.mxu0 %v243_v20  ;;  %2978 = vmatpush3.msra.mxu1 %v476_v56 }
  0x2c   : > { %2927 = vmatmul.mubr.f32.vlgmr.msra.gmra.mxu0 %v226_v21  ;;  %3030 = vmatprep.subr.mxu0 %v3736_v2 }
  0x2d   : > { %2929 = vmatprep.mubr.f32.mxu0 %v227_v22  ;;  %3031 = vmatpush3.msra.mxu0 %v2466_v23 }
  0x2e   : > { %3032 = vmatprep.subr.mxu0 %v3736_v2  ;;  %2979 = vmatprep.subr.mxu1 %v3736_v2 }
  0x2f   : > { %3033 = vmatpush3.msra.mxu0 %v2465_v24  ;;  %2980 = vmatpush3.msra.mxu1 %v475_v58  ;;  %v2482_v24 = vld [vmem:[%s5047_s3 + $0x178] sm:$0xff] }
  0x30   : > { %2930 = vmatmul.mubr.f32.gmra.mxu0 %v228_v25  ;;  %3034 = vmatprep.subr.mxu0 %v3736_v2 }
  0x31   : > { %2932 = vmatprep.mubr.f32.mxu0 %v229_v26  ;;  %3035 = vmatpush3.msra.mxu0 %v2464_v43  ;;  %v2498_v43 = vld [vmem:[%s5047_s3 + $0x1f8] sm:$0xff] }
  0x32   : > { %3036 = vmatprep.subr.mxu0 %v3736_v2  ;;  %2981 = vmatprep.subr.mxu1 %v3736_v2 }
  0x33   : > { %3037 = vmatpush3.msra.mxu0 %v2463_v45  ;;  %2982 = vmatpush3.msra.mxu1 %v474_v60  ;;  %v2478_v45 = vld [vmem:[%s5047_s3 + $0x158] sm:$0xff] }
  0x34   : > { %2933 = vmatmul.mubr.f32.gmra.mxu0 %v230_v27  ;;  %3038 = vmatprep.subr.mxu0 %v3736_v2 }
  0x35   : > { %2935 = vmatprep.mubr.f32.mxu0 %v231_v28  ;;  %3039 = vmatpush3.msra.mxu0 %v2462_v47  ;;  %v2481_v28 = vld [vmem:[%s5047_s3 + $0x170] sm:$0xff] }
  0x36   : > { %3040 = vmatprep.subr.mxu0 %v3736_v2  ;;  %2983 = vmatprep.subr.mxu1 %v3736_v2 }
  0x37   : > { %3041 = vmatpush3.msra.mxu0 %v2461_v49  ;;  %2984 = vmatpush3.msra.mxu1 %v473_v62  ;;  %v2476_v62 = vld [vmem:[%s5047_s3 + $0x148] sm:$0xff] }
  0x38   : > { %2936 = vmatmul.mubr.f32.gmra.mxu0 %v232_v29  ;;  %3042 = vmatprep.subr.mxu0 %v3736_v2 }
  0x39   : > { %2938 = vmatprep.mubr.f32.mxu0 %v233_v30  ;;  %3043 = vmatpush3.msra.mxu0 %v2460_v51 }
  0x3a   : > { %3044 = vmatprep.subr.mxu0 %v3736_v2  ;;  %3107 = vmatprep.subr.mxu1 %v3736_v2 }
  0x3b   : > { %3045 = vmatpush3.msra.mxu0 %v2459_v53  ;;  %v2477_v53 = vld [vmem:[%s5047_s3 + $0x150] sm:$0xff] }
  0x3c   : > { %2939 = vmatmul.mubr.f32.gmra.mxu0 %v234_v31  ;;  %3046 = vmatprep.subr.mxu0 %v3736_v2 }
  0x3d   : > { %2941 = vmatprep.mubr.f32.mxu0 %v235_v32  ;;  %3047 = vmatpush3.msra.mxu0 %v2458_v55  ;;  %v2480_v32 = vld [vmem:[%s5047_s3 + $0x168] sm:$0xff] }
  0x3e   : > { %3048 = vmatprep.subr.mxu0 %v3736_v2 }
  0x3f   : > { %3049 = vmatpush3.msra.mxu0 %v2457_v57 }
  0x40   : > { %2942 = vmatmul.mubr.f32.gmra.mxu0 %v236_v33  ;;  %3050 = vmatprep.subr.mxu0 %v3736_v2 }
  0x41   : > { %2944 = vmatprep.mubr.f32.mxu0 %v237_v34  ;;  %3051 = vmatpush3.msra.mxu0 %v2456_v59 }
  0x42   : > { %3052 = vmatprep.subr.mxu0 %v3736_v2 }
  0x43   : > { %3053 = vmatpush3.msra.mxu0 %v2455_v61  ;;  %v2496_v61 = vld [vmem:[%s5047_s3 + $0x1e8] sm:$0xff] }
  0x44   : > { %2945 = vmatmul.mubr.f32.gmra.mxu0 %v238_v35  ;;  %3054 = vmatprep.subr.mxu0 %v3736_v2 }
  0x45   : > { %2947 = vmatprep.mubr.f32.mxu0 %v239_v36  ;;  %3055 = vmatpush3.msra.mxu0 %v2454_v63  ;;  %v2479_v36 = vld [vmem:[%s5047_s3 + $0x160] sm:$0xff] }
  0x46   : > { %3056 = vmatprep.subr.mxu0 %v3736_v2 }
  0x47   : > { %3057 = vmatpush3.msra.mxu0 %v2453_v0 }
  0x48   : > { %2948 = vmatmul.mubr.f32.gmra.mxu0 %v240_v37  ;;  %3058 = vmatprep.subr.mxu0 %v3736_v2 }
  0x49   : > { %2950 = vmatprep.mubr.f32.mxu0 %v241_v38  ;;  %3059 = vmatpush3.msra.mxu0 %v2452_v1 }
  0x4a   : > { %3060 = vmatprep.subr.mxu0 %v3736_v2 }
  0x4b   : > { %3061 = vmatpush3.msra.mxu0 %v2451_v3 }
  0x4c   : > { %2951 = vmatmul.mubr.f32.gmra.mxu0 %v242_v39  ;;  %3184 = vmatprep.subr.mxu0 %v3736_v2 }
  0x4d   : > { %3062 = vmatprep.mubr.msk.f32.mxu0 %vm3737_vm0, %v3736_v2 }
  0xec   : > { %v2928_v5 = vpop.f32.mrf.mxu0 }
  0xed   : > { %v338_v6 = vadd.f32 %v2928_v5, %v3988_v4  ;;  %v2475_v5 = vld [vmem:[%s5047_s3 + $0x140] sm:$0xff] }
  0xee   : > { %v332_v7 = vpop.f32.mrf.mxu0 }
  0xef   : > { %3690 = vtanh.f32 %v338_v6  ;;  %v333_v8 = vadd.f32 %v3988_v4, %v332_v7 }
  0xf0   : > { %v2931_v9 = vpop.f32.mrf.mxu0 }
  0xf1   : > { %3692 = vtanh.f32 %v333_v8  ;;  %v348_v10 = vadd.f32 %v2931_v9, %v3988_v4  ;;  %v2494_v9 = vld [vmem:[%s5047_s3 + $0x1d8] sm:$0xff] }
  0xf2   : > { %v342_v11 = vpop.f32.mrf.mxu0 }
  0xf3   : > { %3694 = vtanh.f32 %v348_v10  ;;  %v343_v12 = vadd.f32 %v3988_v4, %v342_v11  ;;  %v2474_v10 = vld [vmem:[%s5047_s3 + $0x138] sm:$0xff] }
  0xf4   : > { %v2934_v13 = vpop.f32.mrf.mxu0 }
  0xf5   : > { %3696 = vtanh.f32 %v343_v12  ;;  %v358_v14 = vadd.f32 %v2934_v13, %v3988_v4 }
  0xf6   : > { %v352_v15 = vpop.f32.mrf.mxu0 }
  0xf7   : > { %3698 = vtanh.f32 %v358_v14  ;;  %v353_v16 = vadd.f32 %v3988_v4, %v352_v15  ;;  %v2493_v14 = vld [vmem:[%s5047_s3 + $0x1d0] sm:$0xff] }
  0xf8   : > { %v2937_v17 = vpop.f32.mrf.mxu0  ;;  %v2473_v15 = vld [vmem:[%s5047_s3 + $0x130] sm:$0xff] }
  0xf9   : > { %3700 = vtanh.f32 %v353_v16  ;;  %v368_v18 = vadd.f32 %v2937_v17, %v3988_v4 }
  0xfa   : > { %v362_v19 = vpop.f32.mrf.mxu0 }
  0xfb   : > { %3702 = vtanh.f32 %v368_v18  ;;  %v363_v20 = vadd.f32 %v3988_v4, %v362_v19  ;;  %v2492_v19 = vld [vmem:[%s5047_s3 + $0x1c8] sm:$0xff] }
  0xfc   : > { %v3691_v21 = vpop.eup %3690  ;;  %v2940_v22 = vpop.f32.mrf.mxu0 }
  0xfd   : > { %440 = vst [vmem:[#allocation2 + $0x8] sm:$0xff] %v3691_v21  ;;  %3704 = vtanh.f32 %v363_v20  ;;  %v378_v23 = vadd.f32 %v2940_v22, %v3988_v4  ;;  %v2472_v20 = vld [vmem:[%s5047_s3 + $0x128] sm:$0xff]  ;;  %v2491_v22 = vld [vmem:[%s5047_s3 + $0x1c0] sm:$0xff] }
  0xfe   : > { %v3693_v25 = vpop.eup %3692  ;;  %v372_v26 = vpop.f32.mrf.mxu0 }
  0xff   : > { %439 = vst [vmem:[#allocation2] sm:$0xff] %v3693_v25  ;;  %3706 = vtanh.f32 %v378_v23  ;;  %v373_v27 = vadd.f32 %v3988_v4, %v372_v26  ;;  %2986 = vmatmul.mubr.f32.vlgmr.msra.gmra.mxu1 %v3693_v25  ;;  %v2471_v23 = vld [vmem:[%s5047_s3 + $0x120] sm:$0xff]  ;;  %v2490_v25 = vld [vmem:[%s5047_s3 + $0x1b8] sm:$0xff] }
 0x100   : > { %v3695_v29 = vpop.eup %3694  ;;  %3108 = vmatpush3.msra.mxu1 %v2482_v24  ;;  %v2943_v30 = vpop.f32.mrf.mxu0  ;;  %2988 = vmatprep.mubr.msk.f32.mxu1 %vm3737_vm0, %v3736_v2  ;;  %v2470_v26 = vld [vmem:[%s5047_s3 + $0x118] sm:$0xff] }
 0x101   : > { %442 = vst [vmem:[#allocation2 + $0x18] sm:$0xff] %v3695_v29  ;;  %3708 = vtanh.f32 %v373_v27  ;;  %v388_v31 = vadd.f32 %v2943_v30, %v3988_v4  ;;  %3109 = vmatprep.subr.mxu1 %v3736_v2  ;;  %v2488_v30 = vld [vmem:[%s5047_s3 + $0x1a8] sm:$0xff] }
 0x102   : > { %v3697_v33 = vpop.eup %3696  ;;  %3110 = vmatpush3.msra.mxu1 %v2481_v28  ;;  %v382_v34 = vpop.f32.mrf.mxu0  ;;  %v2489_v28 = vld [vmem:[%s5047_s3 + $0x1b0] sm:$0xff] }
 0x103   : > { %441 = vst [vmem:[#allocation2 + $0x10] sm:$0xff] %v3697_v33  ;;  %3710 = vtanh.f32 %v388_v31  ;;  %2989 = vmatmul.mubr.f32.gmra.mxu1 %v3691_v21  ;;  %v383_v35 = vadd.f32 %v3988_v4, %v382_v34  ;;  %3111 = vmatprep.subr.mxu1 %v3736_v2  ;;  %v2468_v34 = vld [vmem:[%s5047_s3 + $0x108] sm:$0xff] }
 0x104   : > { %v4018_v37 = vpop.eup %3698  ;;  %2991 = vmatprep.mubr.msk.f32.mxu1 %vm3737_vm0, %v3736_v2  ;;  %3112 = vmatpush3.msra.mxu1 %v2480_v32  ;;  %v2946_v38 = vpop.f32.mrf.mxu0  ;;  %v2487_v32 = vld [vmem:[%s5047_s3 + $0x1a0] sm:$0xff] }
 0x105   : > { %444 = vst [vmem:[#allocation2 + $0x28] sm:$0xff] %v4018_v37  ;;  %3712 = vtanh.f32 %v383_v35  ;;  %v398_v39 = vadd.f32 %v2946_v38, %v3988_v4  ;;  %3113 = vmatprep.subr.mxu1 %v3736_v2  ;;  %v2486_v35 = vld [vmem:[%s5047_s3 + $0x198] sm:$0xff]  ;;  %v2467_v38 = vld [vmem:[%s5047_s3 + $0x100] sm:$0xff] }
 0x106   : > { %v3701_v40 = vpop.eup %3700  ;;  %v651_v41 = vld [vmem:[#allocation2 + $0x1] sm:$0xff]  ;;  %3114 = vmatpush3.msra.mxu1 %v2479_v36  ;;  %v392_v42 = vpop.f32.mrf.mxu0  ;;  %v2485_v36 = vld [vmem:[%s5047_s3 + $0x190] sm:$0xff] }
 0x107   : > { %443 = vst [vmem:[#allocation2 + $0x20] sm:$0xff] %v3701_v40  ;;  %3063 = vmatmul.mubr.f32.vlgmr.msra.gmra.mxu0 %v651_v41  ;;  %2992 = vmatmul.mubr.f32.gmra.mxu1 %v3697_v33  ;;  %3714 = vtanh.f32 %v398_v39  ;;  %v393_v44 = vadd.f32 %v3988_v4, %v392_v42  ;;  %v2484_v39 = vld [vmem:[%s5047_s3 + $0x188] sm:$0xff]  ;;  %v2483_v41 = vld [vmem:[%s5047_s3 + $0x180] sm:$0xff]  ;;  %v2514_v42 = vld [vmem:[%s5047_s3 + $0x278] sm:$0xff] }
 0x108   : > { %v4032_v46 = vpop.eup %3702  ;;  %3065 = vmatprep.mubr.msk.f32.mxu0 %vm3737_vm0, %v3736_v2  ;;  %2994 = vmatprep.mubr.msk.f32.mxu1 %vm3737_vm0, %v3736_v2  ;;  %v2949_v47 = vpop.f32.mrf.mxu0 }
 0x109   : > { %446 = vst [vmem:[#allocation2 + $0x38] sm:$0xff] %v4032_v46  ;;  %3716 = vtanh.f32 %v393_v44  ;;  %3115 = vmatprep.subr.mxu1 %v3736_v2  ;;  %v408_v48 = vadd.f32 %v2949_v47, %v3988_v4  ;;  %3185 = vmatpush3.msra.mxu0 %v2498_v43  ;;  %v868_v43 = vld [vmem:[#allocation2 + $0x2] sm:$0xff] }
 0x10a   : > { %v3705_v49 = vpop.eup %3704  ;;  %v652_v50 = vld [vmem:[#allocation2 + $0x9] sm:$0xff]  ;;  %3116 = vmatpush3.msra.mxu1 %v2478_v45  ;;  %v402_v51 = vpop.f32.mrf.mxu0  ;;  %3186 = vmatprep.subr.mxu0 %v3736_v2  ;;  %v653_v59 = vld [vmem:[#allocation2 + $0x11] sm:$0xff] }
 0x10b   : > { %445 = vst [vmem:[#allocation2 + $0x30] sm:$0xff] %v3705_v49  ;;  %3066 = vmatmul.mubr.f32.gmra.mxu0 %v652_v50  ;;  %2995 = vmatmul.mubr.f32.gmra.mxu1 %v3695_v29  ;;  %3718 = vtanh.f32 %v408_v48  ;;  %v403_v54 = vadd.f32 %v3988_v4, %v402_v51  ;;  %v2469_v29 = vld [vmem:[%s5047_s3 + $0x110] sm:$0xff]  ;;  %v2530_v48 = vld [vmem:[%s5047_s3 + $0x2f8] sm:$0xff] }
 0x10c   : > { %v4049_v55 = vpop.eup %3706  ;;  %3068 = vmatprep.mubr.msk.f32.mxu0 %vm3737_vm0, %v3736_v2  ;;  %2997 = vmatprep.mubr.msk.f32.mxu1 %vm3737_vm0, %v3736_v2  ;;  %v2952_v56 = vpop.f32.mrf.mxu0  ;;  %v2513_v45 = vld [vmem:[%s5047_s3 + $0x270] sm:$0xff] }
 0x10d   : > { %448 = vst [vmem:[#allocation2 + $0x48] sm:$0xff] %v4049_v55  ;;  %3117 = vmatprep.subr.mxu1 %v3736_v2  ;;  %3720 = vtanh.f32 %v403_v54  ;;  %v418_v57 = vadd.f32 %v2952_v56, %v3988_v4  ;;  %3187 = vmatpush3.msra.mxu0 %v2497_v52  ;;  %v1085_v47 = vld [vmem:[#allocation2 + $0xc] sm:$0xff]  ;;  %v1086_v51 = vld [vmem:[#allocation2 + $0x14] sm:$0xff] }
 0x10e   : > { %v4058_v58 = vpop.eup %3708  ;;  %3118 = vmatpush3.msra.mxu1 %v2477_v53  ;;  %v412_v60 = vpop.f32.mrf.mxu0  ;;  %3188 = vmatprep.subr.mxu0 %v3736_v2  ;;  %v654_v3 = vld [vmem:[#allocation2 + $0x19] sm:$0xff]  ;;  %v655_v8 = vld [vmem:[#allocation2 + $0x21] sm:$0xff]  ;;  %v2529_v52 = vld [vmem:[%s5047_s3 + $0x2f0] sm:$0xff] }
 0x10f   : > { %447 = vst [vmem:[#allocation2 + $0x40] sm:$0xff] %v4058_v58  ;;  %3069 = vmatmul.mubr.f32.gmra.mxu0 %v653_v59  ;;  %2998 = vmatmul.mubr.f32.gmra.mxu1 %v3701_v40  ;;  %3722 = vtanh.f32 %v418_v57  ;;  %v413_v63 = vadd.f32 %v3988_v4, %v412_v60  ;;  %v2495_v4 = vld [vmem:[%s5047_s3 + $0x1e0] sm:$0xff]  ;;  %v870_v50 = vld [vmem:[#allocation2 + $0x12] sm:$0xff]  ;;  %v2528_v60 = vld [vmem:[%s5047_s3 + $0x2e8] sm:$0xff] }
 0x110   : > { %v4069_v0 = vpop.eup %3710  ;;  %3071 = vmatprep.mubr.msk.f32.mxu0 %vm3737_vm0, %v3736_v2  ;;  %3000 = vmatprep.mubr.msk.f32.mxu1 %vm3737_vm0, %v3736_v2  ;;  %v2511_v53 = vld [vmem:[%s5047_s3 + $0x260] sm:$0xff]  ;;  %v2510_v56 = vld [vmem:[%s5047_s3 + $0x258] sm:$0xff] }
 0x111   : > { %450 = vst [vmem:[#allocation2 + $0x58] sm:$0xff] %v4069_v0  ;;  %3119 = vmatprep.subr.mxu1 %v3736_v2  ;;  %3724 = vtanh.f32 %v413_v63  ;;  %3189 = vmatpush3.msra.mxu0 %v2496_v61  ;;  %v871_v54 = vld [vmem:[#allocation2 + $0x1a] sm:$0xff]  ;;  %v872_v57 = vld [vmem:[#allocation2 + $0x22] sm:$0xff] }
 0x112   : > { %v4077_v1 = vpop.eup %3712  ;;  %3120 = vmatpush3.msra.mxu1 %v2476_v62  ;;  %3190 = vmatprep.subr.mxu0 %v3736_v2  ;;  %v656_v13 = vld [vmem:[#allocation2 + $0x29] sm:$0xff]  ;;  %v657_v18 = vld [vmem:[#allocation2 + $0x31] sm:$0xff] }
 0x113   : > { %449 = vst [vmem:[#allocation2 + $0x50] sm:$0xff] %v4077_v1  ;;  %3072 = vmatmul.mubr.f32.gmra.mxu0 %v654_v3  ;;  %3001 = vmatmul.mubr.f32.gmra.mxu1 %v4018_v37  ;;  %v1088_v59 = vld [vmem:[#allocation2 + $0x24] sm:$0xff]  ;;  %v1089_v63 = vld [vmem:[#allocation2 + $0x2c] sm:$0xff] }
 0x114   : > { %v4088_v6 = vpop.eup %3714  ;;  %3074 = vmatprep.mubr.msk.f32.mxu0 %vm3737_vm0, %v3736_v2  ;;  %3003 = vmatprep.mubr.msk.f32.mxu1 %vm3737_vm0, %v3736_v2  ;;  %v873_v61 = vld [vmem:[#allocation2 + $0x2a] sm:$0xff]  ;;  %v2507_v3 = vld [vmem:[%s5047_s3 + $0x240] sm:$0xff] }
 0x115   : > { %452 = vst [vmem:[#allocation2 + $0x68] sm:$0xff] %v4088_v6  ;;  %3121 = vmatprep.subr.mxu1 %v3736_v2  ;;  %3191 = vmatpush3.msra.mxu0 %v2495_v4  ;;  %v2508_v62 = vld [vmem:[%s5047_s3 + $0x248] sm:$0xff]  ;;  %v1090_v4 = vld [vmem:[#allocation2 + $0x34] sm:$0xff] }
 0x116   : > { %v4096_v7 = vpop.eup %3716  ;;  %3122 = vmatpush3.msra.mxu1 %v2475_v5  ;;  %3192 = vmatprep.subr.mxu0 %v3736_v2  ;;  %v658_v21 = vld [vmem:[#allocation2 + $0x39] sm:$0xff]  ;;  %v659_v24 = vld [vmem:[#allocation2 + $0x41] sm:$0xff]  ;;  %v4300_v5 = vld [vmem:[#allocation2 + $0x90] sm:$0xff] }
 0x117   : > { %451 = vst [vmem:[#allocation2 + $0x60] sm:$0xff] %v4096_v7  ;;  %3075 = vmatmul.mubr.f32.gmra.mxu0 %v655_v8  ;;  %3004 = vmatmul.mubr.f32.gmra.mxu1 %v3705_v49  ;;  %v2512_v49 = vld [vmem:[%s5047_s3 + $0x268] sm:$0xff]  ;;  %v1091_v8 = vld [vmem:[#allocation2 + $0x3c] sm:$0xff] }
 0x118   : > { %v3719_v11 = vpop.eup %3718  ;;  %3077 = vmatprep.mubr.msk.f32.mxu0 %vm3737_vm0, %v3736_v2  ;;  %3006 = vmatprep.mubr.msk.f32.mxu1 %vm3737_vm0, %v3736_v2 }
 0x119   : > { %454 = vst [vmem:[#allocation2 + $0x78] sm:$0xff] %v3719_v11  ;;  %3123 = vmatprep.subr.mxu1 %v3736_v2  ;;  %3193 = vmatpush3.msra.mxu0 %v2494_v9  ;;  %v2525_v9 = vld [vmem:[%s5047_s3 + $0x2d0] sm:$0xff]  ;;  %v876_v11 = vld [vmem:[#allocation2 + $0x42] sm:$0xff] }
 0x11a   : > { %v4111_v12 = vpop.eup %3720  ;;  %3124 = vmatpush3.msra.mxu1 %v2474_v10  ;;  %3194 = vmatprep.subr.mxu0 %v3736_v2  ;;  %v660_v27 = vld [vmem:[#allocation2 + $0x49] sm:$0xff]  ;;  %v661_v31 = vld [vmem:[#allocation2 + $0x51] sm:$0xff] }
 0x11b   : > { %3078 = vmatmul.mubr.f32.gmra.mxu0 %v656_v13  ;;  %453 = vst [vmem:[#allocation2 + $0x70] sm:$0xff] %v4111_v12  ;;  %3007 = vmatmul.mubr.f32.gmra.mxu1 %v4032_v46  ;;  %v869_v46 = vld [vmem:[#allocation2 + $0xa] sm:$0xff] }
 0x11c   : > { %v3723_v16 = vpop.eup %3722  ;;  %3080 = vmatprep.mubr.msk.f32.mxu0 %vm3737_vm0, %v3736_v2  ;;  %3009 = vmatprep.mubr.msk.f32.mxu1 %vm3737_vm0, %v3736_v2  ;;  %v2505_v10 = vld [vmem:[%s5047_s3 + $0x230] sm:$0xff]  ;;  %v2524_v13 = vld [vmem:[%s5047_s3 + $0x2c8] sm:$0xff] }
 0x11d   : > { %456 = vst [vmem:[#allocation2 + $0x88] sm:$0xff] %v3723_v16  ;;  %3125 = vmatprep.subr.mxu1 %v3736_v2  ;;  %3195 = vmatpush3.msra.mxu0 %v2493_v14  ;;  %v2504_v14 = vld [vmem:[%s5047_s3 + $0x228] sm:$0xff] }
 0x11e   : > { %v3725_v17 = vpop.eup %3724  ;;  %3126 = vmatpush3.msra.mxu1 %v2473_v15  ;;  %3196 = vmatprep.subr.mxu0 %v3736_v2  ;;  %v662_v33 = vld [vmem:[#allocation2 + $0x59] sm:$0xff]  ;;  %v663_v37 = vld [vmem:[#allocation2 + $0x61] sm:$0xff]  ;;  %v877_v15 = vld [vmem:[#allocation2 + $0x4a] sm:$0xff] }
 0x11f   : > { %3081 = vmatmul.mubr.f32.gmra.mxu0 %v657_v18  ;;  %455 = vst [vmem:[#allocation2 + $0x80] sm:$0xff] %v3725_v17  ;;  %3010 = vmatmul.mubr.f32.gmra.mxu1 %v4058_v58  ;;  %v2509_v58 = vld [vmem:[%s5047_s3 + $0x250] sm:$0xff]  ;;  %v2523_v17 = vld [vmem:[%s5047_s3 + $0x2c0] sm:$0xff] }
 0x120   : > { %3083 = vmatprep.mubr.msk.f32.mxu0 %vm3737_vm0, %v3736_v2  ;;  %3012 = vmatprep.mubr.msk.f32.mxu1 %vm3737_vm0, %v3736_v2  ;;  %v1093_v16 = vld [vmem:[#allocation2 + $0x4c] sm:$0xff]  ;;  %v2503_v18 = vld [vmem:[%s5047_s3 + $0x220] sm:$0xff] }
 0x121   : > { %3127 = vmatprep.subr.mxu1 %v3736_v2  ;;  %3197 = vmatpush3.msra.mxu0 %v2492_v19  ;;  %v878_v19 = vld [vmem:[#allocation2 + $0x52] sm:$0xff] }
 0x122   : > { %3128 = vmatpush3.msra.mxu1 %v2472_v20  ;;  %3198 = vmatprep.subr.mxu0 %v3736_v2  ;;  %v664_v40 = vld [vmem:[#allocation2 + $0x69] sm:$0xff]  ;;  %v665_v44 = vld [vmem:[#allocation2 + $0x71] sm:$0xff] }
 0x123   : > { %3084 = vmatmul.mubr.f32.gmra.mxu0 %v658_v21  ;;  %3013 = vmatmul.mubr.f32.gmra.mxu1 %v4049_v55  ;;  %v1087_v55 = vld [vmem:[#allocation2 + $0x1c] sm:$0xff]  ;;  %v1094_v20 = vld [vmem:[#allocation2 + $0x54] sm:$0xff] }
 0x124   : > { %3086 = vmatprep.mubr.msk.f32.mxu0 %vm3737_vm0, %v3736_v2  ;;  %3015 = vmatprep.mubr.msk.f32.mxu1 %vm3737_vm0, %v3736_v2  ;;  %v2522_v21 = vld [vmem:[%s5047_s3 + $0x2b8] sm:$0xff] }
 0x125   : > { %3129 = vmatprep.subr.mxu1 %v3736_v2  ;;  %3199 = vmatpush3.msra.mxu0 %v2491_v22  ;;  %v2502_v22 = vld [vmem:[%s5047_s3 + $0x218] sm:$0xff] }
 0x126   : > { %3130 = vmatpush3.msra.mxu1 %v2471_v23  ;;  %3200 = vmatprep.subr.mxu0 %v3736_v2  ;;  %v879_v23 = vld [vmem:[#allocation2 + $0x5a] sm:$0xff] }
 0x127   : > { %3087 = vmatmul.mubr.f32.gmra.mxu0 %v659_v24  ;;  %3016 = vmatmul.mubr.f32.gmra.mxu1 %v4077_v1  ;;  %v874_v1 = vld [vmem:[#allocation2 + $0x32] sm:$0xff]  ;;  %v1095_v24 = vld [vmem:[#allocation2 + $0x5c] sm:$0xff] }
 0x128   : > { %3089 = vmatprep.mubr.msk.f32.mxu0 %vm3737_vm0, %v3736_v2  ;;  %3018 = vmatprep.mubr.msk.f32.mxu1 %vm3737_vm0, %v3736_v2 }
 0x129   : > { %3131 = vmatprep.subr.mxu1 %v3736_v2  ;;  %3201 = vmatpush3.msra.mxu0 %v2490_v25  ;;  %v2521_v25 = vld [vmem:[%s5047_s3 + $0x2b0] sm:$0xff] }
 0x12a   : > { %3132 = vmatpush3.msra.mxu1 %v2470_v26  ;;  %3202 = vmatprep.subr.mxu0 %v3736_v2  ;;  %v2501_v26 = vld [vmem:[%s5047_s3 + $0x210] sm:$0xff] }
 0x12b   : > { %3090 = vmatmul.mubr.f32.gmra.mxu0 %v660_v27  ;;  %3019 = vmatmul.mubr.f32.gmra.mxu1 %v4069_v0  ;;  %v2527_v0 = vld [vmem:[%s5047_s3 + $0x2e0] sm:$0xff] }
 0x12c   : > { %3092 = vmatprep.mubr.msk.f32.mxu0 %vm3737_vm0, %v3736_v2  ;;  %3021 = vmatprep.mubr.msk.f32.mxu1 %vm3737_vm0, %v3736_v2  ;;  %v880_v27 = vld [vmem:[#allocation2 + $0x62] sm:$0xff] }
 0x12d   : > { %3203 = vmatpush3.msra.mxu0 %v2489_v28  ;;  %3133 = vmatprep.subr.mxu1 %v3736_v2  ;;  %v2520_v28 = vld [vmem:[%s5047_s3 + $0x2a8] sm:$0xff] }
 0x12e   : > { %3204 = vmatprep.subr.mxu0 %v3736_v2  ;;  %3134 = vmatpush3.msra.mxu1 %v2469_v29  ;;  %v1096_v29 = vld [vmem:[#allocation2 + $0x64] sm:$0xff] }
 0x12f   : > { %3093 = vmatmul.mubr.f32.gmra.mxu0 %v661_v31  ;;  %3022 = vmatmul.mubr.f32.gmra.mxu1 %v4096_v7  ;;  %v875_v7 = vld [vmem:[#allocation2 + $0x3a] sm:$0xff]  ;;  %v881_v31 = vld [vmem:[#allocation2 + $0x6a] sm:$0xff] }
 0x130   : > { %3095 = vmatprep.mubr.msk.f32.mxu0 %vm3737_vm0, %v3736_v2  ;;  %3205 = vmatpush3.msra.mxu0 %v2488_v30  ;;  %v2519_v30 = vld [vmem:[%s5047_s3 + $0x2a0] sm:$0xff] }
 0x131   : > { %3206 = vmatprep.subr.mxu0 %v3736_v2  ;;  %3024 = vmatprep.mubr.msk.f32.mxu1 %vm3737_vm0, %v3736_v2 }
 0x132   : > { %3207 = vmatpush3.msra.mxu0 %v2487_v32  ;;  %3135 = vmatprep.subr.mxu1 %v3736_v2  ;;  %v1097_v32 = vld [vmem:[#allocation2 + $0x6c] sm:$0xff] }
 0x133   : > { %3096 = vmatmul.mubr.f32.gmra.mxu0 %v662_v33  ;;  %3025 = vmatmul.mubr.f32.gmra.mxu1 %v4088_v6  ;;  %v2526_v6 = vld [vmem:[%s5047_s3 + $0x2d8] sm:$0xff]  ;;  %v2500_v33 = vld [vmem:[%s5047_s3 + $0x208] sm:$0xff] }
 0x134   : > { %3098 = vmatprep.mubr.msk.f32.mxu0 %vm3737_vm0, %v3736_v2  ;;  %3208 = vmatprep.subr.mxu0 %v3736_v2 }
 0x135   : > { %3136 = vmatpush3.msra.mxu1 %v2468_v34  ;;  %3209 = vmatpush3.msra.mxu0 %v2486_v35  ;;  %v2518_v34 = vld [vmem:[%s5047_s3 + $0x298] sm:$0xff]  ;;  %v2517_v35 = vld [vmem:[%s5047_s3 + $0x290] sm:$0xff] }
 0x136   : > { %3210 = vmatprep.subr.mxu0 %v3736_v2  ;;  %3027 = vmatprep.mubr.msk.f32.mxu1 %vm3737_vm0, %v3736_v2 }
 0x137   : > { %3099 = vmatmul.mubr.f32.gmra.mxu0 %v663_v37  ;;  %3028 = vmatmul.mubr.f32.gmra.mxu1 %v4111_v12  ;;  %v1092_v12 = vld [vmem:[#allocation2 + $0x44] sm:$0xff]  ;;  %v882_v37 = vld [vmem:[#allocation2 + $0x72] sm:$0xff] }
 0x138   : > { %3101 = vmatprep.mubr.msk.f32.mxu0 %vm3737_vm0, %v3736_v2  ;;  %3211 = vmatpush3.msra.mxu0 %v2485_v36  ;;  %v1098_v36 = vld [vmem:[#allocation2 + $0x74] sm:$0xff] }
 0x139   : > { %3137 = vmatprep.subr.mxu1 %v3736_v2  ;;  %3212 = vmatprep.subr.mxu0 %v3736_v2 }
 0x13a   : > { %3138 = vmatpush3.msra.mxu1 %v2467_v38  ;;  %3213 = vmatpush3.msra.mxu0 %v2484_v39  ;;  %v2499_v38 = vld [vmem:[%s5047_s3 + $0x200] sm:$0xff]  ;;  %v2516_v39 = vld [vmem:[%s5047_s3 + $0x288] sm:$0xff] }
 0x13b   : > { %3102 = vmatmul.mubr.f32.gmra.mxu0 %v664_v40  ;;  %3214 = vmatprep.subr.mxu0 %v3736_v2  ;;  %v2515_v40 = vld [vmem:[%s5047_s3 + $0x280] sm:$0xff] }
 0x13c   : > { %3104 = vmatprep.mubr.msk.f32.mxu0 %vm3737_vm0, %v3736_v2  ;;  %3139 = vmatprep.mubr.msk.f32.mxu1 %vm3737_vm0, %v3736_v2 }
 0x13d   : > { %3215 = vmatpush3.msra.mxu0 %v2483_v41  ;;  %3261 = vmatprep.subr.mxu1 %v3736_v2  ;;  %v1099_v41 = vld [vmem:[#allocation2 + $0x7c] sm:$0xff] }
 0x13e   : > { %3140 = vmatmul.mubr.f32.vlgmr.msra.gmra.mxu1 %v868_v43  ;;  %3338 = vmatprep.subr.mxu0 %v3736_v2  ;;  %v1302_v43 = vld [vmem:[#allocation2 + $0xd] sm:$0xff] }
 0x13f   : > { %3105 = vmatmul.mubr.f32.gmra.mxu0 %v665_v44  ;;  %3262 = vmatpush3.msra.mxu1 %v2514_v42  ;;  %v2546_v42 = vld [vmem:[%s5047_s3 + $0x378] sm:$0xff]  ;;  %v1519_v44 = vld [vmem:[#allocation2 + $0xe] sm:$0xff] }
 0x140   : > { %3216 = vmatprep.mubr.msk.f32.mxu0 %vm3737_vm0, %v3736_v2  ;;  %3142 = vmatprep.mubr.msk.f32.mxu1 %vm3737_vm0, %v3736_v2 }
 0x141   : > { %3263 = vmatprep.subr.mxu1 %v3736_v2 }
 0x142   : > { %3143 = vmatmul.mubr.f32.gmra.mxu1 %v869_v46  ;;  %v2545_v46 = vld [vmem:[%s5047_s3 + $0x370] sm:$0xff] }
 0x143   : > { %3217 = vmatmul.mubr.f32.vlgmr.msra.gmra.mxu0 %v1085_v47  ;;  %3264 = vmatpush3.msra.mxu1 %v2513_v45  ;;  %v2562_v45 = vld [vmem:[%s5047_s3 + $0x3f8] sm:$0xff] }
 0x144   : > { %3219 = vmatprep.mubr.msk.f32.mxu0 %vm3737_vm0, %v3736_v2  ;;  %3145 = vmatprep.mubr.msk.f32.mxu1 %vm3737_vm0, %v3736_v2  ;;  %v1303_v47 = vld [vmem:[#allocation2 + $0x15] sm:$0xff] }
 0x145   : > { %3265 = vmatprep.subr.mxu1 %v3736_v2  ;;  %3339 = vmatpush3.msra.mxu0 %v2530_v48  ;;  %v1520_v48 = vld [vmem:[#allocation2 + $0x16] sm:$0xff] }
 0x146   : > { %3146 = vmatmul.mubr.f32.gmra.mxu1 %v870_v50  ;;  %3340 = vmatprep.subr.mxu0 %v3736_v2  ;;  %v2544_v50 = vld [vmem:[%s5047_s3 + $0x368] sm:$0xff] }
 0x147   : > { %3220 = vmatmul.mubr.f32.gmra.mxu0 %v1086_v51  ;;  %3266 = vmatpush3.msra.mxu1 %v2512_v49  ;;  %v2561_v49 = vld [vmem:[%s5047_s3 + $0x3f0] sm:$0xff]  ;;  %v1304_v51 = vld [vmem:[#allocation2 + $0x1d] sm:$0xff] }
 0x148   : > { %3222 = vmatprep.mubr.msk.f32.mxu0 %vm3737_vm0, %v3736_v2  ;;  %3148 = vmatprep.mubr.msk.f32.mxu1 %vm3737_vm0, %v3736_v2 }
 0x149   : > { %3267 = vmatprep.subr.mxu1 %v3736_v2  ;;  %3341 = vmatpush3.msra.mxu0 %v2529_v52  ;;  %v1521_v52 = vld [vmem:[#allocation2 + $0x1e] sm:$0xff] }
 0x14a   : > { %3149 = vmatmul.mubr.f32.gmra.mxu1 %v871_v54  ;;  %3342 = vmatprep.subr.mxu0 %v3736_v2  ;;  %v2543_v54 = vld [vmem:[%s5047_s3 + $0x360] sm:$0xff] }
 0x14b   : > { %3223 = vmatmul.mubr.f32.gmra.mxu0 %v1087_v55  ;;  %3268 = vmatpush3.msra.mxu1 %v2511_v53  ;;  %v2560_v53 = vld [vmem:[%s5047_s3 + $0x3e8] sm:$0xff] }
 0x14c   : > { %3225 = vmatprep.mubr.msk.f32.mxu0 %vm3737_vm0, %v3736_v2  ;;  %3269 = vmatprep.subr.mxu1 %v3736_v2  ;;  %v1305_v55 = vld [vmem:[#allocation2 + $0x25] sm:$0xff] }
 0x14d   : > { %3151 = vmatprep.mubr.msk.f32.mxu1 %vm3737_vm0, %v3736_v2  ;;  %3270 = vmatpush3.msra.mxu1 %v2510_v56  ;;  %v1522_v56 = vld [vmem:[#allocation2 + $0x26] sm:$0xff] }
 0x14e   : > { %3152 = vmatmul.mubr.f32.gmra.mxu1 %v872_v57  ;;  %3271 = vmatprep.subr.mxu1 %v3736_v2  ;;  %v2542_v57 = vld [vmem:[%s5047_s3 + $0x358] sm:$0xff] }
 0x14f   : > { %3226 = vmatmul.mubr.f32.gmra.mxu0 %v1088_v59  ;;  %3154 = vmatprep.mubr.msk.f32.mxu1 %vm3737_vm0, %v3736_v2  ;;  %v2541_v59 = vld [vmem:[%s5047_s3 + $0x350] sm:$0xff] }
 0x150   : > { %3228 = vmatprep.mubr.msk.f32.mxu0 %vm3737_vm0, %v3736_v2  ;;  %3272 = vmatpush3.msra.mxu1 %v2509_v58  ;;  %v1306_v58 = vld [vmem:[#allocation2 + $0x2d] sm:$0xff] }
 0x151   : > { %3273 = vmatprep.subr.mxu1 %v3736_v2  ;;  %3343 = vmatpush3.msra.mxu0 %v2528_v60  ;;  %v1523_v60 = vld [vmem:[#allocation2 + $0x2e] sm:$0xff] }
 0x152   : > { %3155 = vmatmul.mubr.f32.gmra.mxu1 %v873_v61  ;;  %3344 = vmatprep.subr.mxu0 %v3736_v2  ;;  %v2559_v61 = vld [vmem:[%s5047_s3 + $0x3e0] sm:$0xff] }
 0x153   : > { %3229 = vmatmul.mubr.f32.gmra.mxu0 %v1089_v63  ;;  %3157 = vmatprep.mubr.msk.f32.mxu1 %vm3737_vm0, %v3736_v2  ;;  %v2540_v63 = vld [vmem:[%s5047_s3 + $0x348] sm:$0xff] }
 0x154   : > { %3231 = vmatprep.mubr.msk.f32.mxu0 %vm3737_vm0, %v3736_v2  ;;  %3274 = vmatpush3.msra.mxu1 %v2508_v62  ;;  %v1307_v62 = vld [vmem:[#allocation2 + $0x35] sm:$0xff] }
 0x155   : > { %3275 = vmatprep.subr.mxu1 %v3736_v2  ;;  %3345 = vmatpush3.msra.mxu0 %v2527_v0  ;;  %v2506_v2 = vld [vmem:[%s5047_s3 + $0x238] sm:$0xff] }
 0x156   : > { %3158 = vmatmul.mubr.f32.gmra.mxu1 %v874_v1  ;;  %3346 = vmatprep.subr.mxu0 %v4300_v5  ;;  %v1524_v0 = vld [vmem:[#allocation2 + $0x36] sm:$0xff] }
 0x157   : > { %3232 = vmatmul.mubr.f32.gmra.mxu0 %v1090_v4  ;;  %3160 = vmatprep.mubr.msk.f32.mxu1 %vm3737_vm0, %v4300_v5  ;;  %v2558_v1 = vld [vmem:[%s5047_s3 + $0x3d8] sm:$0xff]  ;;  %v2539_v4 = vld [vmem:[%s5047_s3 + $0x340] sm:$0xff] }
 0x158   : > { %3234 = vmatprep.mubr.msk.f32.mxu0 %vm3737_vm0, %v4300_v5  ;;  %3276 = vmatpush3.msra.mxu1 %v2507_v3  ;;  %v1308_v3 = vld [vmem:[#allocation2 + $0x3d] sm:$0xff] }
 0x159   : > { %3277 = vmatprep.subr.mxu1 %v4300_v5  ;;  %3347 = vmatpush3.msra.mxu0 %v2526_v6  ;;  %v1525_v6 = vld [vmem:[#allocation2 + $0x3e] sm:$0xff] }
 0x15a   : > { %3161 = vmatmul.mubr.f32.gmra.mxu1 %v875_v7  ;;  %3348 = vmatprep.subr.mxu0 %v4300_v5  ;;  %v2538_v7 = vld [vmem:[%s5047_s3 + $0x338] sm:$0xff] }
 0x15b   : > { %3235 = vmatmul.mubr.f32.gmra.mxu0 %v1091_v8  ;;  %3278 = vmatpush3.msra.mxu1 %v2506_v2  ;;  %v2557_v2 = vld [vmem:[%s5047_s3 + $0x3d0] sm:$0xff]  ;;  %v1309_v8 = vld [vmem:[#allocation2 + $0x45] sm:$0xff] }
 0x15c   : > { %3237 = vmatprep.mubr.msk.f32.mxu0 %vm3737_vm0, %v4300_v5  ;;  %3163 = vmatprep.mubr.msk.f32.mxu1 %vm3737_vm0, %v4300_v5 }
 0x15d   : > { %3279 = vmatprep.subr.mxu1 %v4300_v5  ;;  %3349 = vmatpush3.msra.mxu0 %v2525_v9  ;;  %v1526_v9 = vld [vmem:[#allocation2 + $0x46] sm:$0xff] }
 0x15e   : > { %3164 = vmatmul.mubr.f32.gmra.mxu1 %v876_v11  ;;  %3350 = vmatprep.subr.mxu0 %v4300_v5  ;;  %v2537_v11 = vld [vmem:[%s5047_s3 + $0x330] sm:$0xff] }
 0x15f   : > { %3238 = vmatmul.mubr.f32.gmra.mxu0 %v1092_v12  ;;  %3280 = vmatpush3.msra.mxu1 %v2505_v10  ;;  %v2556_v10 = vld [vmem:[%s5047_s3 + $0x3c8] sm:$0xff] }
 0x160   : > { %3240 = vmatprep.mubr.msk.f32.mxu0 %vm3737_vm0, %v4300_v5  ;;  %3166 = vmatprep.mubr.msk.f32.mxu1 %vm3737_vm0, %v4300_v5  ;;  %v1310_v12 = vld [vmem:[#allocation2 + $0x4d] sm:$0xff] }
 0x161   : > { %3281 = vmatprep.subr.mxu1 %v4300_v5  ;;  %3351 = vmatpush3.msra.mxu0 %v2524_v13  ;;  %v1527_v13 = vld [vmem:[#allocation2 + $0x4e] sm:$0xff] }
 0x162   : > { %3167 = vmatmul.mubr.f32.gmra.mxu1 %v877_v15  ;;  %3352 = vmatprep.subr.mxu0 %v4300_v5  ;;  %v2536_v15 = vld [vmem:[%s5047_s3 + $0x328] sm:$0xff] }
 0x163   : > { %3241 = vmatmul.mubr.f32.gmra.mxu0 %v1093_v16  ;;  %3282 = vmatpush3.msra.mxu1 %v2504_v14  ;;  %v2555_v14 = vld [vmem:[%s5047_s3 + $0x3c0] sm:$0xff]  ;;  %v1311_v16 = vld [vmem:[#allocation2 + $0x55] sm:$0xff] }
 0x164   : > { %3243 = vmatprep.mubr.msk.f32.mxu0 %vm3737_vm0, %v4300_v5  ;;  %3169 = vmatprep.mubr.msk.f32.mxu1 %vm3737_vm0, %v4300_v5 }
 0x165   : > { %3283 = vmatprep.subr.mxu1 %v4300_v5  ;;  %3353 = vmatpush3.msra.mxu0 %v2523_v17  ;;  %v1528_v17 = vld [vmem:[#allocation2 + $0x56] sm:$0xff] }
 0x166   : > { %3170 = vmatmul.mubr.f32.gmra.mxu1 %v878_v19  ;;  %3354 = vmatprep.subr.mxu0 %v4300_v5  ;;  %v2535_v19 = vld [vmem:[%s5047_s3 + $0x320] sm:$0xff] }
 0x167   : > { %3244 = vmatmul.mubr.f32.gmra.mxu0 %v1094_v20  ;;  %3284 = vmatpush3.msra.mxu1 %v2503_v18  ;;  %v2554_v18 = vld [vmem:[%s5047_s3 + $0x3b8] sm:$0xff] }
 0x168   : > { %3246 = vmatprep.mubr.msk.f32.mxu0 %vm3737_vm0, %v4300_v5  ;;  %3172 = vmatprep.mubr.msk.f32.mxu1 %vm3737_vm0, %v4300_v5  ;;  %v1312_v20 = vld [vmem:[#allocation2 + $0x5d] sm:$0xff] }
 0x169   : > { %3285 = vmatprep.subr.mxu1 %v4300_v5  ;;  %3355 = vmatpush3.msra.mxu0 %v2522_v21  ;;  %v1529_v21 = vld [vmem:[#allocation2 + $0x5e] sm:$0xff] }
 0x16a   : > { %3173 = vmatmul.mubr.f32.gmra.mxu1 %v879_v23  ;;  %3356 = vmatprep.subr.mxu0 %v4300_v5  ;;  %v2534_v23 = vld [vmem:[%s5047_s3 + $0x318] sm:$0xff] }
 0x16b   : > { %3247 = vmatmul.mubr.f32.gmra.mxu0 %v1095_v24  ;;  %3286 = vmatpush3.msra.mxu1 %v2502_v22  ;;  %v2553_v22 = vld [vmem:[%s5047_s3 + $0x3b0] sm:$0xff]  ;;  %v1313_v24 = vld [vmem:[#allocation2 + $0x65] sm:$0xff] }
 0x16c   : > { %3249 = vmatprep.mubr.msk.f32.mxu0 %vm3737_vm0, %v4300_v5  ;;  %3175 = vmatprep.mubr.msk.f32.mxu1 %vm3737_vm0, %v4300_v5 }
 0x16d   : > { %3357 = vmatpush3.msra.mxu0 %v2521_v25  ;;  %3287 = vmatprep.subr.mxu1 %v4300_v5  ;;  %v1530_v25 = vld [vmem:[#allocation2 + $0x66] sm:$0xff] }
 0x16e   : > { %3176 = vmatmul.mubr.f32.gmra.mxu1 %v880_v27  ;;  %3358 = vmatprep.subr.mxu0 %v4300_v5  ;;  %v2533_v27 = vld [vmem:[%s5047_s3 + $0x310] sm:$0xff] }
 0x16f   : > { %3250 = vmatmul.mubr.f32.gmra.mxu0 %v1096_v29  ;;  %3288 = vmatpush3.msra.mxu1 %v2501_v26  ;;  %v2552_v26 = vld [vmem:[%s5047_s3 + $0x3a8] sm:$0xff] }
 0x170   : > { %3252 = vmatprep.mubr.msk.f32.mxu0 %vm3737_vm0, %v4300_v5  ;;  %3359 = vmatpush3.msra.mxu0 %v2520_v28  ;;  %v1314_v28 = vld [vmem:[#allocation2 + $0x6d] sm:$0xff] }
 0x171   : > { %3360 = vmatprep.subr.mxu0 %v4300_v5  ;;  %3178 = vmatprep.mubr.msk.f32.mxu1 %vm3737_vm0, %v4300_v5  ;;  %v1531_v29 = vld [vmem:[#allocation2 + $0x6e] sm:$0xff] }
 0x172   : > { %3361 = vmatpush3.msra.mxu0 %v2519_v30  ;;  %3179 = vmatmul.mubr.f32.gmra.mxu1 %v881_v31  ;;  %v2551_v30 = vld [vmem:[%s5047_s3 + $0x3a0] sm:$0xff]  ;;  %v2532_v31 = vld [vmem:[%s5047_s3 + $0x308] sm:$0xff] }
 0x173   : > { %3253 = vmatmul.mubr.f32.gmra.mxu0 %v1097_v32  ;;  %3289 = vmatprep.subr.mxu1 %v4300_v5  ;;  %v1315_v32 = vld [vmem:[#allocation2 + $0x75] sm:$0xff] }
 0x174   : > { %3255 = vmatprep.mubr.msk.f32.mxu0 %vm3737_vm0, %v4300_v5  ;;  %3362 = vmatprep.subr.mxu0 %v4300_v5 }
 0x175   : > { %3290 = vmatpush3.msra.mxu1 %v2500_v33  ;;  %3363 = vmatpush3.msra.mxu0 %v2518_v34  ;;  %v2550_v33 = vld [vmem:[%s5047_s3 + $0x398] sm:$0xff] }
 0x176   : > { %3364 = vmatprep.subr.mxu0 %v4300_v5  ;;  %3181 = vmatprep.mubr.msk.f32.mxu1 %vm3737_vm0, %v4300_v5  ;;  %v1532_v34 = vld [vmem:[#allocation2 + $0x76] sm:$0xff] }
 0x177   : > { %3256 = vmatmul.mubr.f32.gmra.mxu0 %v1098_v36  ;;  %3182 = vmatmul.mubr.f32.gmra.mxu1 %v882_v37  ;;  %v1316_v36 = vld [vmem:[#allocation2 + $0x7d] sm:$0xff] }
 0x178   : > { %3258 = vmatprep.mubr.msk.f32.mxu0 %vm3737_vm0, %v4300_v5  ;;  %3365 = vmatpush3.msra.mxu0 %v2517_v35  ;;  %v2549_v35 = vld [vmem:[%s5047_s3 + $0x390] sm:$0xff]  ;;  %v2531_v37 = vld [vmem:[%s5047_s3 + $0x300] sm:$0xff] }
 0x179   : > { %3291 = vmatprep.subr.mxu1 %v4300_v5  ;;  %3366 = vmatprep.subr.mxu0 %v4300_v5 }
 0x17a   : > { %3292 = vmatpush3.msra.mxu1 %v2499_v38  ;;  %3367 = vmatpush3.msra.mxu0 %v2516_v39  ;;  %v1533_v38 = vld [vmem:[#allocation2 + $0x7e] sm:$0xff]  ;;  %v2548_v39 = vld [vmem:[%s5047_s3 + $0x388] sm:$0xff] }
 0x17b   : > { %3259 = vmatmul.mubr.f32.gmra.mxu0 %v1099_v41  ;;  %3368 = vmatprep.subr.mxu0 %v4300_v5  ;;  %v2578_v41 = vld [vmem:[%s5047_s3 + $0x478] sm:$0xff] }
 0x17c   : > { %3293 = vmatprep.mubr.msk.f32.mxu1 %vm3737_vm0, %v4300_v5  ;;  %3369 = vmatpush3.msra.mxu0 %v2515_v40  ;;  %v2547_v40 = vld [vmem:[%s5047_s3 + $0x380] sm:$0xff] }
 0x17d   : > { %3370 = vmatprep.mubr.msk.f32.mxu0 %vm3737_vm0, %v4300_v5  ;;  %3415 = vmatprep.subr.mxu1 %v4300_v5 }
 0x17e   : > { %3294 = vmatmul.mubr.f32.vlgmr.msra.gmra.mxu1 %v1302_v43  ;;  %3492 = vmatprep.subr.mxu0 %v4300_v5  ;;  %v1953_v43 = vld [vmem:[#allocation2 + $0x19] sm:$0xff] }
 0x17f   : > { %3371 = vmatmul.mubr.f32.vlgmr.msra.gmra.mxu0 %v1519_v44  ;;  %3416 = vmatpush3.msra.mxu1 %v2546_v42  ;;  %v1736_v42 = vld [vmem:[#allocation2 + $0x18] sm:$0xff]  ;;  %v2577_v44 = vld [vmem:[%s5047_s3 + $0x470] sm:$0xff] }
 0x180   : > { %3296 = vmatprep.mubr.msk.f32.mxu1 %vm3737_vm0, %v4300_v5  ;;  %3373 = vmatprep.mubr.msk.f32.mxu0 %vm3737_vm0, %v4300_v5 }
 0x181   : > { %3417 = vmatprep.subr.mxu1 %v4300_v5  ;;  %3493 = vmatpush3.msra.mxu0 %v2562_v45  ;;  %v1737_v45 = vld [vmem:[#allocation2 + $0x20] sm:$0xff] }
 0x182   : > { %3297 = vmatmul.mubr.f32.gmra.mxu1 %v1303_v47  ;;  %3494 = vmatprep.subr.mxu0 %v4300_v5 }
 0x183   : > { %3374 = vmatmul.mubr.f32.gmra.mxu0 %v1520_v48  ;;  %3418 = vmatpush3.msra.mxu1 %v2545_v46  ;;  %v1954_v46 = vld [vmem:[#allocation2 + $0x21] sm:$0xff] }
 0x184   : > { %3299 = vmatprep.mubr.msk.f32.mxu1 %vm3737_vm0, %v4300_v5  ;;  %3376 = vmatprep.mubr.msk.f32.mxu0 %vm3737_vm0, %v4300_v5  ;;  %v2576_v48 = vld [vmem:[%s5047_s3 + $0x468] sm:$0xff] }
 0x185   : > { %3419 = vmatprep.subr.mxu1 %v4300_v5  ;;  %3495 = vmatpush3.msra.mxu0 %v2561_v49 }
 0x186   : > { %3300 = vmatmul.mubr.f32.gmra.mxu1 %v1304_v51  ;;  %3496 = vmatprep.subr.mxu0 %v4300_v5  ;;  %v1955_v51 = vld [vmem:[#allocation2 + $0x29] sm:$0xff] }
 0x187   : > { %3377 = vmatmul.mubr.f32.gmra.mxu0 %v1521_v52  ;;  %3420 = vmatpush3.msra.mxu1 %v2544_v50  ;;  %v1738_v50 = vld [vmem:[#allocation2 + $0x28] sm:$0xff]  ;;  %v4632_v52 = vld [vmem:[%s5048_s4] ss:$0 sm:$0xff] }
 0x188   : > { %3302 = vmatprep.mubr.msk.f32.mxu1 %vm3737_vm0, %v4300_v5  ;;  %3379 = vmatprep.mubr.msk.f32.mxu0 %vm3737_vm0, %v4300_v5 }
 0x189   : > { %3421 = vmatprep.subr.mxu1 %v4300_v5  ;;  %3497 = vmatpush3.msra.mxu0 %v2560_v53 }
 0x18a   : > { %3303 = vmatmul.mubr.f32.gmra.mxu1 %v1305_v55  ;;  %3498 = vmatprep.subr.mxu0 %v4300_v5 }
 0x18b   : > { %3380 = vmatmul.mubr.f32.gmra.mxu0 %v1522_v56  ;;  %3422 = vmatpush3.msra.mxu1 %v2543_v54  ;;  %v2575_v54 = vld [vmem:[%s5047_s3 + $0x460] sm:$0xff] }
 0x18c   : > { %3423 = vmatprep.subr.mxu1 %v4300_v5  ;;  %3305 = vmatprep.mubr.msk.f32.mxu1 %vm3737_vm0, %v4300_v5 }
 0x18d   : > { %3382 = vmatprep.mubr.msk.f32.mxu0 %vm3737_vm0, %v4300_v5  ;;  %3424 = vmatpush3.msra.mxu1 %v2542_v57 }
 0x18e   : > { %3306 = vmatmul.mubr.f32.gmra.mxu1 %v1306_v58  ;;  %3425 = vmatprep.subr.mxu1 %v4300_v5  ;;  %v1739_v58 = vld [vmem:[#allocation2 + $0x30] sm:$0xff] }
 0x18f   : > { %3383 = vmatmul.mubr.f32.gmra.mxu0 %v1523_v60  ;;  %3308 = vmatprep.mubr.msk.f32.mxu1 %vm3737_vm0, %v4300_v5  ;;  %v2574_v60 = vld [vmem:[%s5047_s3 + $0x458] sm:$0xff] }
 0x190   : > { %3385 = vmatprep.mubr.msk.f32.mxu0 %vm3737_vm0, %v4300_v5  ;;  %3426 = vmatpush3.msra.mxu1 %v2541_v59  ;;  %v1956_v59 = vld [vmem:[#allocation2 + $0x31] sm:$0xff] }
 0x191   : > { %3427 = vmatprep.subr.mxu1 %v4300_v5  ;;  %3499 = vmatpush3.msra.mxu0 %v2559_v61 }
 0x192   : > { %3309 = vmatmul.mubr.f32.gmra.mxu1 %v1307_v62  ;;  %3500 = vmatprep.subr.mxu0 %v4300_v5 }
 0x193   : > { %3386 = vmatmul.mubr.f32.gmra.mxu0 %v1524_v0  ;;  %3311 = vmatprep.mubr.msk.f32.mxu1 %vm3737_vm0, %v4300_v5 }
 0x194   : > { %3388 = vmatprep.mubr.msk.f32.mxu0 %vm3737_vm0, %v4300_v5  ;;  %3428 = vmatpush3.msra.mxu1 %v2540_v63 }
 0x195   : > { %3429 = vmatprep.subr.mxu1 %v4300_v5  ;;  %3501 = vmatpush3.msra.mxu0 %v2558_v1 }
 0x196   : > { %3312 = vmatmul.mubr.f32.gmra.mxu1 %v1308_v3  ;;  %3502 = vmatprep.subr.mxu0 %v4300_v5 }
 0x197   : > { %3389 = vmatmul.mubr.f32.gmra.mxu0 %v1525_v6  ;;  %3314 = vmatprep.mubr.msk.f32.mxu1 %vm3737_vm0, %v4300_v5  ;;  %v1957_v6 = vld [vmem:[#allocation2 + $0x39] sm:$0xff] }
 0x198   : > { %3391 = vmatprep.mubr.msk.f32.mxu0 %vm3737_vm0, %v4300_v5  ;;  %3430 = vmatpush3.msra.mxu1 %v2539_v4  ;;  %v1740_v4 = vld [vmem:[#allocation2 + $0x38] sm:$0xff] }
 0x199   : > { %3431 = vmatprep.subr.mxu1 %v4300_v5  ;;  %3503 = vmatpush3.msra.mxu0 %v2557_v2  ;;  %v2573_v2 = vld [vmem:[%s5047_s3 + $0x450] sm:$0xff] }
 0x19a   : > { %3315 = vmatmul.mubr.f32.gmra.mxu1 %v1309_v8  ;;  %3504 = vmatprep.subr.mxu0 %v4300_v5 }
 0x19b   : > { %3392 = vmatmul.mubr.f32.gmra.mxu0 %v1526_v9  ;;  %3432 = vmatpush3.msra.mxu1 %v2538_v7 }
 0x19c   : > { %3317 = vmatprep.mubr.msk.f32.mxu1 %vm3737_vm0, %v4300_v5  ;;  %3394 = vmatprep.mubr.msk.f32.mxu0 %vm3737_vm0, %v4300_v5 }
 0x19d   : > { %3433 = vmatprep.subr.mxu1 %v4300_v5  ;;  %3505 = vmatpush3.msra.mxu0 %v2556_v10 }
 0x19e   : > { %3318 = vmatmul.mubr.f32.gmra.mxu1 %v1310_v12  ;;  %3506 = vmatprep.subr.mxu0 %v4300_v5 }
 0x19f   : > { %3395 = vmatmul.mubr.f32.gmra.mxu0 %v1527_v13  ;;  %3434 = vmatpush3.msra.mxu1 %v2537_v11  ;;  %v1741_v13 = vld [vmem:[#allocation2 + $0x40] sm:$0xff] }
 0x1a0   : > { %3320 = vmatprep.mubr.msk.f32.mxu1 %vm3737_vm0, %v4300_v5  ;;  %3397 = vmatprep.mubr.msk.f32.mxu0 %vm3737_vm0, %v4300_v5 }
 0x1a1   : > { %3435 = vmatprep.subr.mxu1 %v4300_v5  ;;  %3507 = vmatpush3.msra.mxu0 %v2555_v14  ;;  %v1958_v14 = vld [vmem:[#allocation2 + $0x41] sm:$0xff] }
 0x1a2   : > { %3321 = vmatmul.mubr.f32.gmra.mxu1 %v1311_v16  ;;  %3508 = vmatprep.subr.mxu0 %v4300_v5 }
 0x1a3   : > { %3398 = vmatmul.mubr.f32.gmra.mxu0 %v1528_v17  ;;  %3436 = vmatpush3.msra.mxu1 %v2536_v15  ;;  %v4672_v15 = vld [vmem:[%s5047_s3 + $0x448] sm:$0xff] }
 0x1a4   : > { %3323 = vmatprep.mubr.msk.f32.mxu1 %vm3737_vm0, %v4300_v5  ;;  %3400 = vmatprep.mubr.msk.f32.mxu0 %vm3737_vm0, %v4300_v5 }
 0x1a5   : > { %3437 = vmatprep.subr.mxu1 %v4300_v5  ;;  %3509 = vmatpush3.msra.mxu0 %v2554_v18 }
 0x1a6   : > { %3324 = vmatmul.mubr.f32.gmra.mxu1 %v1312_v20  ;;  %3510 = vmatprep.subr.mxu0 %v4300_v5 }
 0x1a7   : > { %3401 = vmatmul.mubr.f32.gmra.mxu0 %v1529_v21  ;;  %3438 = vmatpush3.msra.mxu1 %v2535_v19 }
 0x1a8   : > { %3326 = vmatprep.mubr.msk.f32.mxu1 %vm3737_vm0, %v4300_v5  ;;  %3403 = vmatprep.mubr.msk.f32.mxu0 %vm3737_vm0, %v4300_v5 }
 0x1a9   : > { %3439 = vmatprep.subr.mxu1 %v4300_v5  ;;  %3511 = vmatpush3.msra.mxu0 %v2553_v22  ;;  %v1742_v22 = vld [vmem:[#allocation2 + $0x48] sm:$0xff] }
 0x1aa   : > { %3327 = vmatmul.mubr.f32.gmra.mxu1 %v1313_v24  ;;  %3512 = vmatprep.subr.mxu0 %v4300_v5  ;;  %v4687_v24 = vld [vmem:[%s5047_s3 + $0x440] sm:$0xff] }
 0x1ab   : > { %3404 = vmatmul.mubr.f32.gmra.mxu0 %v1530_v25  ;;  %3440 = vmatpush3.msra.mxu1 %v2534_v23  ;;  %v1959_v23 = vld [vmem:[#allocation2 + $0x49] sm:$0xff] }
 0x1ac   : > { %3329 = vmatprep.mubr.msk.f32.mxu1 %vm3737_vm0, %v4300_v5  ;;  %3406 = vmatprep.mubr.msk.f32.mxu0 %vm3737_vm0, %v4300_v5 }
 0x1ad   : > { %3441 = vmatprep.subr.mxu1 %v4300_v5  ;;  %3513 = vmatpush3.msra.mxu0 %v2552_v26 }
 0x1ae   : > { %3330 = vmatmul.mubr.f32.gmra.mxu1 %v1314_v28  ;;  %3514 = vmatprep.subr.mxu0 %v4300_v5 }
 0x1af   : > { %3407 = vmatmul.mubr.f32.gmra.mxu0 %v1531_v29  ;;  %3442 = vmatpush3.msra.mxu1 %v2533_v27 }
 0x1b0   : > { %3332 = vmatprep.mubr.msk.f32.mxu1 %vm3737_vm0, %v4300_v5  ;;  %3409 = vmatprep.mubr.msk.f32.mxu0 %vm3737_vm0, %v4300_v5 }
 0x1b1   : > { %3515 = vmatpush3.msra.mxu0 %v2551_v30  ;;  %3443 = vmatprep.subr.mxu1 %v4300_v5  ;;  %v4700_v30 = vld [vmem:[%s5047_s3 + $0x438] sm:$0xff] }
 0x1b2   : > { %3333 = vmatmul.mubr.f32.gmra.mxu1 %v1315_v32  ;;  %3516 = vmatprep.subr.mxu0 %v4300_v5  ;;  %v1743_v32 = vld [vmem:[#allocation2 + $0x50] sm:$0xff] }
 0x1b3   : > { %3410 = vmatmul.mubr.f32.gmra.mxu0 %v1532_v34  ;;  %3444 = vmatpush3.msra.mxu1 %v2532_v31 }
 0x1b4   : > { %3517 = vmatpush3.msra.mxu0 %v2550_v33  ;;  %3335 = vmatprep.mubr.msk.f32.mxu1 %vm3737_vm0, %v4300_v5  ;;  %v1960_v33 = vld [vmem:[#allocation2 + $0x51] sm:$0xff] }
 0x1b5   : > { %3518 = vmatprep.subr.mxu0 %v4300_v5  ;;  %3412 = vmatprep.mubr.msk.f32.mxu0 %vm3737_vm0, %v4300_v5 }
 0x1b6   : > { %3519 = vmatpush3.msra.mxu0 %v2549_v35  ;;  %3336 = vmatmul.mubr.f32.gmra.mxu1 %v1316_v36  ;;  %v4709_v36 = vld [vmem:[%s5047_s3 + $0x430] sm:$0xff] }
 0x1b7   : > { %3413 = vmatmul.mubr.f32.gmra.mxu0 %v1533_v38  ;;  %3445 = vmatprep.subr.mxu1 %v4300_v5 }
 0x1b8   : > { %3520 = vmatprep.subr.mxu0 %v4300_v5  ;;  %3446 = vmatpush3.msra.mxu1 %v2531_v37 }
 0x1b9   : > { %3521 = vmatpush3.msra.mxu0 %v2548_v39  ;;  %3447 = vmatprep.mubr.msk.f32.mxu1 %vm3737_vm0, %v4300_v5 }
 0x1ba   : > { %3522 = vmatprep.subr.mxu0 %v4300_v5  ;;  %3524 = vmatprep.mubr.msk.f32.mxu0 %vm3737_vm0, %v4300_v5 }
 0x1bb   : > { %3523 = vmatpush3.msra.mxu0 %v2547_v40  ;;  %3646 = vmatprep.subr.mxu1 %v4300_v5 }
 0x1bc   : > { %3448 = vmatmul.mubr.f32.vlgmr.msra.gmra.mxu1 %v1736_v42  ;;  %3525 = vmatmul.mubr.f32.vlgmr.msra.gmra.mxu0 %v1953_v43  ;;  %v1961_v42 = vld [vmem:[#allocation2 + $0x59] sm:$0xff] }
 0x1bd   : > { %3662 = vmatpush3.msra.mxu1 %v2578_v41  ;;  %3450 = vmatprep.mubr.msk.f32.mxu1 %vm3737_vm0, %v4300_v5 }
 0x1be   : > { %3527 = vmatprep.mubr.msk.f32.mxu0 %vm3737_vm0, %v4300_v5  ;;  %3647 = vmatprep.subr.mxu1 %v4300_v5 }
 0x1bf   : > { %3663 = vmatpush3.msra.mxu1 %v2577_v44  ;;  %v562_v47 = vpop.f32.mrf.mxu1  ;;  %3569 = vmatprep.subr.mxu0 %v4300_v5 }
 0x1c0   : > { %3451 = vmatmul.mubr.f32.gmra.mxu1 %v1737_v45  ;;  %3528 = vmatmul.mubr.f32.gmra.mxu0 %v1954_v46  ;;  %v563_v56 = vadd.f32 %v4632_v52, %v562_v47  ;;  %v4725_v45 = vld [vmem:[%s5047_s3 + $0x428] sm:$0xff] }
 0x1c1   : > { %3453 = vmatprep.mubr.msk.f32.mxu1 %vm3737_vm0, %v4300_v5  ;;  %3530 = vmatprep.mubr.msk.f32.mxu0 %vm3737_vm0, %v4300_v5  ;;  %v2987_v49 = vpop.f32.mrf.mxu1 }
 0x1c2   : > { %3648 = vmatprep.subr.mxu1 %v4300_v5  ;;  %3570 = vmatpush3.msra.mxu0 %v2578_v41  ;;  %v1744_v41 = vld [vmem:[#allocation2 + $0x58] sm:$0xff] }
 0x1c3   : > { %3664 = vmatpush3.msra.mxu1 %v2576_v48  ;;  %v567_v53 = vpop.f32.mrf.mxu1  ;;  %3571 = vmatprep.subr.mxu0 %v4300_v5 }
 0x1c4   : > { %3454 = vmatmul.mubr.f32.gmra.mxu1 %v1738_v50  ;;  %3531 = vmatmul.mubr.f32.gmra.mxu0 %v1955_v51  ;;  %v568_v1 = vadd.f32 %v4632_v52, %v567_v53  ;;  %v1745_v50 = vld [vmem:[#allocation2 + $0x60] sm:$0xff] }
 0x1c5   : > { %3456 = vmatprep.mubr.msk.f32.mxu1 %vm3737_vm0, %v4300_v5  ;;  %3533 = vmatprep.mubr.msk.f32.mxu0 %vm3737_vm0, %v4300_v5  ;;  %v2990_v55 = vpop.f32.mrf.mxu1  ;;  %v1962_v51 = vld [vmem:[#allocation2 + $0x61] sm:$0xff] }
 0x1c6   : > { %3649 = vmatprep.subr.mxu1 %v4300_v5  ;;  %3572 = vmatpush3.msra.mxu0 %v2577_v44  ;;  %v2567_v55 = vld [vmem:[%s5047_s3 + $0x420] sm:$0xff] }
 0x1c7   : > { %v749_v57 = vpop.f32.mrf.mxu0  ;;  %3665 = vmatpush3.msra.mxu1 %v2575_v54  ;;  %v572_v61 = vpop.f32.mrf.mxu1  ;;  %3573 = vmatprep.subr.mxu0 %v4300_v5 }
 0x1c8   : > { %v4648_v62 = vadd.f32 %v749_v57, %v563_v56  ;;  %3457 = vmatmul.mubr.f32.gmra.mxu1 %v1739_v58  ;;  %3534 = vmatmul.mubr.f32.gmra.mxu0 %v1956_v59  ;;  %v573_v11 = vadd.f32 %v4632_v52, %v572_v61  ;;  %v1963_v61 = vld [vmem:[#allocation2 + $0x69] sm:$0xff] }
 0x1c9   : > { %v3064_v63 = vpop.f32.mrf.mxu0  ;;  %3650 = vmatprep.subr.mxu1 %v4300_v5  ;;  %3459 = vmatprep.mubr.msk.f32.mxu1 %vm3737_vm0, %v4300_v5  ;;  %v2993_v0 = vpop.f32.mrf.mxu1 }
 0x1ca   : > { %3536 = vmatprep.mubr.msk.f32.mxu0 %vm3737_vm0, %v4300_v5  ;;  %3666 = vmatpush3.msra.mxu1 %v2574_v60 }
 0x1cb   : > { %v754_v3 = vpop.f32.mrf.mxu0  ;;  %3651 = vmatprep.subr.mxu1 %v4300_v5  ;;  %v577_v7 = vpop.f32.mrf.mxu1  ;;  %3574 = vmatpush3.msra.mxu0 %v2576_v48 }
 0x1cc   : > { %v4660_v8 = vadd.f32 %v754_v3, %v568_v1  ;;  %3460 = vmatmul.mubr.f32.gmra.mxu1 %v1740_v4  ;;  %3537 = vmatmul.mubr.f32.gmra.mxu0 %v1957_v6  ;;  %v578_v20 = vadd.f32 %v4632_v52, %v577_v7  ;;  %v2566_v1 = vld [vmem:[%s5047_s3 + $0x418] sm:$0xff]  ;;  %v1747_v7 = vld [vmem:[#allocation2 + $0x70] sm:$0xff] }
 0x1cd   : > { %v3067_v9 = vpop.f32.mrf.mxu0  ;;  %3462 = vmatprep.mubr.msk.f32.mxu1 %vm3737_vm0, %v4300_v5  ;;  %3539 = vmatprep.mubr.msk.f32.mxu0 %vm3737_vm0, %v4300_v5  ;;  %v2996_v10 = vpop.f32.mrf.mxu1 }
 0x1ce   : > { %3667 = vmatpush3.msra.mxu1 %v2573_v2  ;;  %3575 = vmatprep.subr.mxu0 %v4300_v5  ;;  %v1964_v9 = vld [vmem:[#allocation2 + $0x71] sm:$0xff] }
 0x1cf   : > { %v759_v12 = vpop.f32.mrf.mxu0  ;;  %3652 = vmatprep.subr.mxu1 %v4300_v5  ;;  %v582_v16 = vpop.f32.mrf.mxu1  ;;  %3576 = vmatpush3.msra.mxu0 %v2575_v54 }
 0x1d0   : > { %v4674_v17 = vadd.f32 %v759_v12, %v573_v11  ;;  %3463 = vmatmul.mubr.f32.gmra.mxu1 %v1741_v13  ;;  %3540 = vmatmul.mubr.f32.gmra.mxu0 %v1958_v14  ;;  %v583_v29 = vadd.f32 %v4632_v52, %v582_v16  ;;  %v2565_v12 = vld [vmem:[%s5047_s3 + $0x410] sm:$0xff] }
 0x1d1   : > { %v3070_v18 = vpop.f32.mrf.mxu0  ;;  %3465 = vmatprep.mubr.msk.f32.mxu1 %vm3737_vm0, %v4300_v5  ;;  %3542 = vmatprep.mubr.msk.f32.mxu0 %vm3737_vm0, %v4300_v5  ;;  %v2999_v19 = vpop.f32.mrf.mxu1 }
 0x1d2   : > { %3668 = vmatpush3.msra.mxu1 %v4672_v15  ;;  %3577 = vmatprep.subr.mxu0 %v4300_v5  ;;  %v1748_v18 = vld [vmem:[#allocation2 + $0x78] sm:$0xff] }
 0x1d3   : > { %v764_v21 = vpop.f32.mrf.mxu0  ;;  %3653 = vmatprep.subr.mxu1 %v4300_v5  ;;  %v587_v25 = vpop.f32.mrf.mxu1  ;;  %3578 = vmatpush3.msra.mxu0 %v2574_v60  ;;  %v1746_v60 = vld [vmem:[#allocation2 + $0x68] sm:$0xff]  ;;  %v1965_v19 = vld [vmem:[#allocation2 + $0x79] sm:$0xff] }
 0x1d4   : > { %v4689_v26 = vadd.f32 %v764_v21, %v578_v20  ;;  %3466 = vmatmul.mubr.f32.gmra.mxu1 %v1742_v22  ;;  %3543 = vmatmul.mubr.f32.gmra.mxu0 %v1959_v23  ;;  %v588_v39 = vadd.f32 %v4632_v52, %v587_v25  ;;  %v2564_v25 = vld [vmem:[%s5047_s3 + $0x408] sm:$0xff] }
 0x1d5   : > { %v3073_v27 = vpop.f32.mrf.mxu0  ;;  %3468 = vmatprep.mubr.msk.f32.mxu1 %vm3737_vm0, %v4300_v5  ;;  %3545 = vmatprep.mubr.msk.f32.mxu0 %vm3737_vm0, %v4300_v5  ;;  %v3002_v28 = vpop.f32.mrf.mxu1 }
 0x1d6   : > { %3669 = vmatpush3.msra.mxu1 %v4687_v24  ;;  %3579 = vmatprep.subr.mxu0 %v4300_v5  ;;  %v1749_v28 = vld [vmem:[#allocation2 + $0x80] sm:$0xff] }
 0x1d7   : > { %v769_v31 = vpop.f32.mrf.mxu0  ;;  %3654 = vmatprep.subr.mxu1 %v4300_v5  ;;  %v592_v34 = vpop.f32.mrf.mxu1  ;;  %3580 = vmatpush3.msra.mxu0 %v2573_v2 }
 0x1d8   : > { %v4704_v35 = vadd.f32 %v769_v31, %v583_v29  ;;  %3469 = vmatmul.mubr.f32.gmra.mxu1 %v1743_v32  ;;  %3546 = vmatmul.mubr.f32.gmra.mxu0 %v1960_v33  ;;  %v593_v48 = vadd.f32 %v4632_v52, %v592_v34  ;;  %v1966_v29 = vld [vmem:[#allocation2 + $0x81] sm:$0xff] }
 0x1d9   : > { %v3076_v37 = vpop.f32.mrf.mxu0  ;;  %3670 = vmatpush3.msra.mxu1 %v4700_v30  ;;  %3471 = vmatprep.mubr.msk.f32.mxu1 %vm3737_vm0, %v4300_v5  ;;  %v3005_v38 = vpop.f32.mrf.mxu1 }
 0x1da   : > { %3548 = vmatprep.mubr.msk.f32.mxu0 %vm3737_vm0, %v4300_v5  ;;  %3655 = vmatprep.subr.mxu1 %v4300_v5  ;;  %v1750_v37 = vld [vmem:[#allocation2 + $0x88] sm:$0xff] }
 0x1db   : > { %v774_v40 = vpop.f32.mrf.mxu0  ;;  %3671 = vmatpush3.msra.mxu1 %v4709_v36  ;;  %v597_v43 = vpop.f32.mrf.mxu1  ;;  %3581 = vmatprep.subr.mxu0 %v4300_v5 }
 0x1dc   : > { %v4720_v44 = vadd.f32 %v774_v40, %v588_v39  ;;  %3472 = vmatmul.mubr.f32.gmra.mxu1 %v1744_v41  ;;  %3549 = vmatmul.mubr.f32.gmra.mxu0 %v1961_v42  ;;  %v598_v58 = vadd.f32 %v4632_v52, %v597_v43  ;;  %v1967_v40 = vld [vmem:[#allocation2 + $0x89] sm:$0xff]  ;;  %v2563_v41 = vld [vmem:[%s5047_s3 + $0x400] sm:$0xff] }
 0x1dd   : > { %v3079_v46 = vpop.f32.mrf.mxu0  ;;  %3474 = vmatprep.mubr.msk.f32.mxu1 %vm3737_vm0, %v4300_v5  ;;  %3551 = vmatprep.mubr.msk.f32.mxu0 %vm3737_vm0, %v4300_v5  ;;  %v3008_v47 = vpop.f32.mrf.mxu1 }
 0x1de   : > { %3656 = vmatprep.subr.mxu1 %v4300_v5  ;;  %3582 = vmatpush3.msra.mxu0 %v4672_v15 }
 0x1df   : > { %v779_v49 = vpop.f32.mrf.mxu0  ;;  %3672 = vmatpush3.msra.mxu1 %v4725_v45  ;;  %3583 = vmatprep.subr.mxu0 %v4300_v5  ;;  %v602_v53 = vpop.f32.mrf.mxu1 }
 0x1e0   : > { %v4736_v54 = vadd.f32 %v779_v49, %v593_v48  ;;  %3475 = vmatmul.mubr.f32.gmra.mxu1 %v1745_v50  ;;  %3552 = vmatmul.mubr.f32.gmra.mxu0 %v1962_v51  ;;  %v603_v6 = vadd.f32 %v4632_v52, %v602_v53  ;;  %v2170_v49 = vld [vmem:[#allocation2 + $0x1a] sm:$0xff]  ;;  %v2173_v50 = vld [vmem:[#allocation2 + $0x32] sm:$0xff] }
 0x1e1   : > { %v3082_v56 = vpop.f32.mrf.mxu0  ;;  %3477 = vmatprep.mubr.msk.f32.mxu1 %vm3737_vm0, %v4300_v5  ;;  %3554 = vmatprep.mubr.msk.f32.mxu0 %vm3737_vm0, %v4300_v5  ;;  %v3011_v57 = vpop.f32.mrf.mxu1 }
 0x1e2   : > { %3657 = vmatprep.subr.mxu1 %v4300_v5  ;;  %3584 = vmatpush3.msra.mxu0 %v4687_v24 }
 0x1e3   : > { %v784_v59 = vpop.f32.mrf.mxu0  ;;  %3673 = vmatpush3.msra.mxu1 %v2567_v55  ;;  %3585 = vmatprep.subr.mxu0 %v4300_v5  ;;  %v607_v63 = vpop.f32.mrf.mxu1 }
 0x1e4   : > { %v4749_v0 = vadd.f32 %v784_v59, %v598_v58  ;;  %3478 = vmatmul.mubr.f32.gmra.mxu1 %v1746_v60  ;;  %3555 = vmatmul.mubr.f32.gmra.mxu0 %v1963_v61  ;;  %v608_v15 = vadd.f32 %v4632_v52, %v607_v63  ;;  %v2171_v58 = vld [vmem:[#allocation2 + $0x22] sm:$0xff]  ;;  %v2174_v59 = vld [vmem:[#allocation2 + $0x3a] sm:$0xff] }
 0x1e5   : > { %v3085_v3 = vpop.f32.mrf.mxu0  ;;  %3480 = vmatprep.mubr.msk.f32.mxu1 %vm3737_vm0, %v4300_v5  ;;  %3557 = vmatprep.mubr.msk.f32.mxu0 %vm3737_vm0, %v4300_v5  ;;  %v3014_v4 = vpop.f32.mrf.mxu1 }
 0x1e6   : > { %3658 = vmatprep.subr.mxu1 %v4300_v5  ;;  %3586 = vmatpush3.msra.mxu0 %v4700_v30  ;;  %v4787_v30 = vld [vmem:[#allocation2 + $0x90] sm:$0xff] }
 0x1e7   : > { %v789_v2 = vpop.f32.mrf.mxu0  ;;  %3674 = vmatpush3.msra.mxu1 %v2566_v1  ;;  %3587 = vmatprep.subr.mxu0 %v4300_v5  ;;  %v612_v10 = vpop.f32.mrf.mxu1 }
 0x1e8   : > { %v4762_v11 = vadd.f32 %v789_v2, %v603_v6  ;;  %3481 = vmatmul.mubr.f32.gmra.mxu1 %v1747_v7  ;;  %3558 = vmatmul.mubr.f32.gmra.mxu0 %v1964_v9  ;;  %v613_v24 = vadd.f32 %v4632_v52, %v612_v10  ;;  %v2172_v6 = vld [vmem:[#allocation2 + $0x2a] sm:$0xff]  ;;  %v2175_v7 = vld [vmem:[#allocation2 + $0x42] sm:$0xff] }
 0x1e9   : > { %v3088_v13 = vpop.f32.mrf.mxu0  ;;  %3483 = vmatprep.mubr.msk.f32.mxu1 %vm3737_vm0, %v4300_v5  ;;  %3560 = vmatprep.mubr.msk.f32.mxu0 %vm3737_vm0, %v4300_v5  ;;  %v3017_v14 = vpop.f32.mrf.mxu1 }
 0x1ea   : > { %3588 = vmatpush3.msra.mxu0 %v4709_v36  ;;  %3659 = vmatprep.subr.mxu1 %v4300_v5 }
 0x1eb   : > { %v794_v16 = vpop.f32.mrf.mxu0  ;;  %3589 = vmatprep.subr.mxu0 %v4300_v5  ;;  %3675 = vmatpush3.msra.mxu1 %v2565_v12  ;;  %v617_v20 = vpop.f32.mrf.mxu1 }
 0x1ec   : > { %v4775_v21 = vadd.f32 %v794_v16, %v608_v15  ;;  %3484 = vmatmul.mubr.f32.gmra.mxu1 %v1748_v18  ;;  %3561 = vmatmul.mubr.f32.gmra.mxu0 %v1965_v19  ;;  %v618_v34 = vadd.f32 %v4632_v52, %v617_v20  ;;  %v2176_v15 = vld [vmem:[#allocation2 + $0x4a] sm:$0xff] }
 0x1ed   : > { %3590 = vmatpush3.msra.mxu0 %v4725_v45  ;;  %v3091_v22 = vpop.f32.mrf.mxu0  ;;  %3486 = vmatprep.mubr.msk.f32.mxu1 %vm3737_vm0, %v4300_v5  ;;  %v3020_v23 = vpop.f32.mrf.mxu1 }
 0x1ee   : > { %3591 = vmatprep.subr.mxu0 %v4300_v5  ;;  %3563 = vmatprep.mubr.msk.f32.mxu0 %vm3737_vm0, %v4300_v5  ;;  %v2177_v23 = vld [vmem:[#allocation2 + $0x52] sm:$0xff] }
 0x1ef   : > { %3592 = vmatpush3.msra.mxu0 %v2567_v55  ;;  %v799_v27 = vpop.f32.mrf.mxu0  ;;  %3660 = vmatprep.subr.mxu1 %v4787_v30  ;;  %v622_v31 = vpop.f32.mrf.mxu1 }
 0x1f0   : > { %v4790_v32 = vadd.f32 %v799_v27, %v613_v24  ;;  %3487 = vmatmul.mubr.f32.gmra.mxu1 %v1749_v28  ;;  %3564 = vmatmul.mubr.f32.gmra.mxu0 %v1966_v29  ;;  %v623_v45 = vadd.f32 %v4632_v52, %v622_v31  ;;  %v2178_v31 = vld [vmem:[#allocation2 + $0x5a] sm:$0xff] }
 0x1f1   : > { %3593 = vmatprep.subr.mxu0 %v4787_v30  ;;  %3676 = vmatpush3.msra.mxu1 %v2564_v25  ;;  %v3094_v5 = vpop.f32.mrf.mxu0  ;;  %v3023_v33 = vpop.f32.mrf.mxu1 }
 0x1f2   : > { %3594 = vmatpush3.msra.mxu0 %v2566_v1  ;;  %3489 = vmatprep.mubr.msk.f32.mxu1 %vm3737_vm0, %v4787_v30 }
 0x1f3   : > { %3595 = vmatprep.subr.mxu0 %v4787_v30  ;;  %3566 = vmatprep.mubr.msk.f32.mxu0 %vm3737_vm0, %v4787_v30  ;;  %v804_v36 = vpop.f32.mrf.mxu0  ;;  %v627_v38 = vpop.f32.mrf.mxu1 }
 0x1f4   : > { %3596 = vmatpush3.msra.mxu0 %v2565_v12  ;;  %v4799_v39 = vadd.f32 %v804_v36, %v618_v34  ;;  %3490 = vmatmul.mubr.f32.gmra.mxu1 %v1750_v37  ;;  %v628_v55 = vadd.f32 %v4632_v52, %v627_v38  ;;  %v2179_v38 = vld [vmem:[#allocation2 + $0x62] sm:$0xff] }
 0x1f5   : > { %3567 = vmatmul.mubr.f32.gmra.mxu0 %v1967_v40  ;;  %3597 = vmatprep.subr.mxu0 %v4787_v30  ;;  %v3097_v42 = vpop.f32.mrf.mxu0  ;;  %v3026_v43 = vpop.f32.mrf.mxu1 }
 0x1f6   : > { %3661 = vmatprep.subr.mxu1 %v4787_v30  ;;  %3598 = vmatpush3.msra.mxu0 %v2564_v25 }
 0x1f7   : > { %3677 = vmatpush3.msra.mxu1 %v2563_v41  ;;  %3599 = vmatprep.subr.mxu0 %v4787_v30  ;;  %v809_v46 = vpop.f32.mrf.mxu0  ;;  %v632_v47 = vpop.f32.mrf.mxu1 }
 0x1f8   : > { %3600 = vmatpush3.msra.mxu0 %v2563_v41  ;;  %3601 = vmatprep.mubr.msk.f32.mxu0 %vm3737_vm0, %v4787_v30  ;;  %v4810_v48 = vadd.f32 %v809_v46, %v623_v45  ;;  %v633_v61 = vadd.f32 %v4632_v52, %v632_v47  ;;  %v2180_v46 = vld [vmem:[#allocation2 + $0x6a] sm:$0xff] }
 0x1f9   : > { %3610 = vmatprep.mubr.msk.f32.mxu1 %vm3737_vm0, %v4787_v30  ;;  %3602 = vmatmul.mubr.f32.vlgmr.msra.gmra.mxu0 %v2170_v49  ;;  %v3100_v51 = vpop.f32.mrf.mxu0  ;;  %v3029_v53 = vpop.f32.mrf.mxu1 }
 0x1fa   : > { %3611 = vmatmul.mubr.f32.vlgmr.msra.gmra.mxu1 %v2173_v50  ;;  %3604 = vmatprep.mubr.msk.f32.mxu0 %vm3737_vm0, %v4787_v30 }
 0x1fb   : > { %3613 = vmatprep.mubr.msk.f32.mxu1 %vm3737_vm0, %v4787_v30  ;;  %v814_v56 = vpop.f32.mrf.mxu0 }
 0x1fc   : > { %v4819_v57 = vadd.f32 %v814_v56, %v628_v55  ;;  %v2181_v55 = vld [vmem:[#allocation2 + $0x72] sm:$0xff] }
 0x1fd   : > { %3605 = vmatmul.mubr.f32.gmra.mxu0 %v2171_v58  ;;  %v3103_v60 = vpop.f32.mrf.mxu0 }
 0x1fe   : > { %3614 = vmatmul.mubr.f32.gmra.mxu1 %v2174_v59  ;;  %3607 = vmatprep.mubr.msk.f32.mxu0 %vm3737_vm0, %v4787_v30  ;;  %v966_v63 = vpop.f32.mrf.mxu1 }
 0x1ff   : > { %3616 = vmatprep.mubr.msk.f32.mxu1 %vm3737_vm0, %v4787_v30  ;;  %v819_v1 = vpop.f32.mrf.mxu0  ;;  %v1055_v3 = vadd.f32 %v966_v63, %v4648_v62  ;;  %v2182_v63 = vld [vmem:[#allocation2 + $0x7a] sm:$0xff] }
 0x200   : > { %v4827_v4 = vadd.f32 %v819_v1, %v633_v61  ;;  %v3141_v2 = vpop.f32.mrf.mxu1 }
 0x201   : > { %3608 = vmatmul.mubr.f32.gmra.mxu0 %v2172_v6  ;;  %v3106_v9 = vpop.f32.mrf.mxu0 }
 0x202   : > { %3617 = vmatmul.mubr.f32.gmra.mxu1 %v2175_v7  ;;  %v971_v10 = vpop.f32.mrf.mxu1  ;;  %v2183_v9 = vld [vmem:[#allocation2 + $0x82] sm:$0xff] }
 0x203   : > { %3619 = vmatprep.mubr.msk.f32.mxu1 %vm3737_vm0, %v4787_v30  ;;  %v1183_v52 = vpop.f32.mrf.mxu0  ;;  %v1056_v12 = vadd.f32 %v971_v10, %v4660_v8 }
 0x204   : > { %v4832_v13 = vadd.f32 %v1183_v52, %v1055_v3  ;;  %v3144_v14 = vpop.f32.mrf.mxu1 }
 0x205   : > { %v3218_v62 = vpop.f32.mrf.mxu0 }
 0x206   : > { %3620 = vmatmul.mubr.f32.gmra.mxu1 %v2176_v15  ;;  %v976_v16 = vpop.f32.mrf.mxu1  ;;  %v2184_v62 = vld [vmem:[#allocation2 + $0x8a] sm:$0xff] }
 0x207   : > { %3622 = vmatprep.mubr.msk.f32.mxu1 %vm3737_vm0, %v4787_v30  ;;  %v1188_v18 = vpop.f32.mrf.mxu0  ;;  %v1057_v19 = vadd.f32 %v976_v16, %v4674_v17 }
 0x208   : > { %v4837_v20 = vadd.f32 %v1188_v18, %v1056_v12  ;;  %v3147_v22 = vpop.f32.mrf.mxu1 }
 0x209   : > { %v3221_v24 = vpop.f32.mrf.mxu0 }
 0x20a   : > { %3623 = vmatmul.mubr.f32.gmra.mxu1 %v2177_v23  ;;  %v981_v8 = vpop.f32.mrf.mxu1 }
 0x20b   : > { %3625 = vmatprep.mubr.msk.f32.mxu1 %vm3737_vm0, %v4787_v30  ;;  %v1193_v25 = vpop.f32.mrf.mxu0  ;;  %v1058_v27 = vadd.f32 %v981_v8, %v4689_v26 }
 0x20c   : > { %v4842_v28 = vadd.f32 %v1193_v25, %v1057_v19  ;;  %v3150_v29 = vpop.f32.mrf.mxu1 }
 0x20d   : > { %v3224_v5 = vpop.f32.mrf.mxu0 }
 0x20e   : > { %3626 = vmatmul.mubr.f32.gmra.mxu1 %v2178_v31  ;;  %v986_v17 = vpop.f32.mrf.mxu1 }
 0x20f   : > { %3628 = vmatprep.mubr.msk.f32.mxu1 %vm3737_vm0, %v4787_v30  ;;  %v1198_v33 = vpop.f32.mrf.mxu0  ;;  %v1059_v34 = vadd.f32 %v986_v17, %v4704_v35 }
 0x210   : > { %v4847_v36 = vadd.f32 %v1198_v33, %v1058_v27  ;;  %v3153_v37 = vpop.f32.mrf.mxu1 }
 0x211   : > { %v3227_v40 = vpop.f32.mrf.mxu0 }
 0x212   : > { %3629 = vmatmul.mubr.f32.gmra.mxu1 %v2179_v38  ;;  %v991_v26 = vpop.f32.mrf.mxu1 }
 0x213   : > { %3631 = vmatprep.mubr.msk.f32.mxu1 %vm3737_vm0, %v4787_v30  ;;  %v1203_v41 = vpop.f32.mrf.mxu0  ;;  %v1060_v42 = vadd.f32 %v991_v26, %v4720_v44 }
 0x214   : > { %v4852_v43 = vadd.f32 %v1203_v41, %v1059_v34  ;;  %v3156_v45 = vpop.f32.mrf.mxu1 }
 0x215   : > { %v3230_v47 = vpop.f32.mrf.mxu0 }
 0x216   : > { %3632 = vmatmul.mubr.f32.gmra.mxu1 %v2180_v46  ;;  %v996_v35 = vpop.f32.mrf.mxu1 }
 0x217   : > { %3634 = vmatprep.mubr.msk.f32.mxu1 %vm3737_vm0, %v4787_v30  ;;  %v1208_v49 = vpop.f32.mrf.mxu0  ;;  %v1061_v50 = vadd.f32 %v996_v35, %v4736_v54 }
 0x218   : > { %v4857_v51 = vadd.f32 %v1208_v49, %v1060_v42  ;;  %v3159_v53 = vpop.f32.mrf.mxu1 }
 0x219   : > { %v3233_v56 = vpop.f32.mrf.mxu0 }
 0x21a   : > { %3635 = vmatmul.mubr.f32.gmra.mxu1 %v2181_v55  ;;  %v1001_v44 = vpop.f32.mrf.mxu1 }
 0x21b   : > { %3637 = vmatprep.mubr.msk.f32.mxu1 %vm3737_vm0, %v4787_v30  ;;  %v1213_v58 = vpop.f32.mrf.mxu0  ;;  %v1062_v59 = vadd.f32 %v1001_v44, %v4749_v0 }
 0x21c   : > { %v4862_v60 = vadd.f32 %v1213_v58, %v1061_v50  ;;  %v3162_v61 = vpop.f32.mrf.mxu1 }
 0x21d   : > { %v3236_v1 = vpop.f32.mrf.mxu0 }
 0x21e   : > { %3638 = vmatmul.mubr.f32.gmra.mxu1 %v2182_v63  ;;  %v1006_v54 = vpop.f32.mrf.mxu1 }
 0x21f   : > { %3640 = vmatprep.mubr.msk.f32.mxu1 %vm3737_vm0, %v4787_v30  ;;  %v1218_v3 = vpop.f32.mrf.mxu0  ;;  %v1063_v6 = vadd.f32 %v1006_v54, %v4762_v11 }
 0x220   : > { %v4867_v2 = vadd.f32 %v1218_v3, %v1062_v59  ;;  %v3165_v7 = vpop.f32.mrf.mxu1 }
 0x221   : > { %v3239_v10 = vpop.f32.mrf.mxu0 }
 0x222   : > { %3641 = vmatmul.mubr.f32.gmra.mxu1 %v2183_v9  ;;  %v1011_v0 = vpop.f32.mrf.mxu1 }
 0x223   : > { %3643 = vmatprep.mubr.msk.f32.mxu1 %vm3737_vm0, %v4787_v30  ;;  %v1223_v52 = vpop.f32.mrf.mxu0  ;;  %v1064_v12 = vadd.f32 %v1011_v0, %v4775_v21 }
 0x224   : > { %v4872_v14 = vadd.f32 %v1223_v52, %v1063_v6  ;;  %v3168_v15 = vpop.f32.mrf.mxu1 }
 0x225   : > { %v3242_v16 = vpop.f32.mrf.mxu0 }
 0x226   : > { %3644 = vmatmul.mubr.f32.gmra.mxu1 %v2184_v62  ;;  %v1016_v11 = vpop.f32.mrf.mxu1 }
 0x227   : > { %v1228_v18 = vpop.f32.mrf.mxu0  ;;  %v1065_v19 = vadd.f32 %v1016_v11, %v4790_v32 }
 0x228   : > { %v4875_v22 = vadd.f32 %v1228_v18, %v1064_v12  ;;  %v3171_v23 = vpop.f32.mrf.mxu1 }
 0x229   : > { %v3245_v24 = vpop.f32.mrf.mxu0 }
 0x22a   : > { %v1021_v8 = vpop.f32.mrf.mxu1 }
 0x22b   : > { %v1233_v25 = vpop.f32.mrf.mxu0  ;;  %v1066_v30 = vadd.f32 %v1021_v8, %v4799_v39 }
 0x22c   : > { %v4878_v27 = vadd.f32 %v1233_v25, %v1065_v19  ;;  %v3174_v21 = vpop.f32.mrf.mxu1 }
 0x22d   : > { %v3248_v29 = vpop.f32.mrf.mxu0 }
 0x22e   : > { %v1026_v31 = vpop.f32.mrf.mxu1 }
 0x22f   : > { %v1238_v5 = vpop.f32.mrf.mxu0  ;;  %v1067_v17 = vadd.f32 %v1026_v31, %v4810_v48 }
 0x230   : > { %v4881_v33 = vadd.f32 %v1238_v5, %v1066_v30  ;;  %v3177_v34 = vpop.f32.mrf.mxu1 }
 0x231   : > { %v3251_v32 = vpop.f32.mrf.mxu0 }
 0x232   : > { %v1031_v37 = vpop.f32.mrf.mxu1 }
 0x233   : > { %v1243_v38 = vpop.f32.mrf.mxu0  ;;  %v1068_v40 = vadd.f32 %v1031_v37, %v4819_v57 }
 0x234   : > { %v4884_v26 = vadd.f32 %v1243_v38, %v1067_v17  ;;  %v3180_v41 = vpop.f32.mrf.mxu1 }
 0x235   : > { %v3254_v39 = vpop.f32.mrf.mxu0 }
 0x237   : > { %v1248_v42 = vpop.f32.mrf.mxu0  ;;  %v1036_v45 = vpop.f32.mrf.mxu1 }
 0x238   : > { %v4886_v46 = vadd.f32 %v1248_v42, %v1068_v40  ;;  %v1069_v47 = vadd.f32 %v1036_v45, %v4827_v4 }
 0x239   : > { %v3257_v35 = vpop.f32.mrf.mxu0  ;;  %v3183_v48 = vpop.f32.mrf.mxu1 }
 0x23b   : > { %v1253_v49 = vpop.f32.mrf.mxu0 }
 0x23c   : > { %v4889_v50 = vadd.f32 %v1253_v49, %v1069_v47 }
 0x23d   : > { %v3260_v53 = vpop.f32.mrf.mxu0 }
 0x23e   : > { %v1400_v55 = vpop.f32.mrf.mxu1 }
 0x23f   : > { %v1489_v56 = vadd.f32 %v1400_v55, %v4832_v13  ;;  %v1617_v57 = vpop.f32.mrf.mxu0 }
 0x240   : > { %v3295_v44 = vpop.f32.mrf.mxu1 }
 0x241   : > { %v4892_v58 = vadd.f32 %v1617_v57, %v1489_v56  ;;  %v3372_v59 = vpop.f32.mrf.mxu0 }
 0x242   : > { %v1405_v61 = vpop.f32.mrf.mxu1 }
 0x243   : > { %v1490_v63 = vadd.f32 %v1405_v61, %v4837_v20  ;;  %v1622_v1 = vpop.f32.mrf.mxu0 }
 0x244   : > { %v3298_v54 = vpop.f32.mrf.mxu1 }
 0x245   : > { %v4895_v4 = vadd.f32 %v1622_v1, %v1490_v63  ;;  %v3375_v3 = vpop.f32.mrf.mxu0 }
 0x246   : > { %v1410_v6 = vpop.f32.mrf.mxu1 }
 0x247   : > { %v1491_v7 = vadd.f32 %v1410_v6, %v4842_v28  ;;  %v1627_v9 = vpop.f32.mrf.mxu0 }
 0x248   : > { %v3301_v10 = vpop.f32.mrf.mxu1 }
 0x249   : > { %v4898_v0 = vadd.f32 %v1627_v9, %v1491_v7  ;;  %v3378_v13 = vpop.f32.mrf.mxu0 }
 0x24a   : > { %v1415_v52 = vpop.f32.mrf.mxu1 }
 0x24b   : > { %v1492_v12 = vadd.f32 %v1415_v52, %v4847_v36  ;;  %v1632_v15 = vpop.f32.mrf.mxu0 }
 0x24c   : > { %v3304_v62 = vpop.f32.mrf.mxu1 }
 0x24d   : > { %v4901_v16 = vadd.f32 %v1632_v15, %v1492_v12  ;;  %v3381_v20 = vpop.f32.mrf.mxu0 }
 0x24e   : > { %v1420_v11 = vpop.f32.mrf.mxu1 }
 0x24f   : > { %v1493_v18 = vadd.f32 %v1420_v11, %v4852_v43  ;;  %v1637_v19 = vpop.f32.mrf.mxu0 }
 0x250   : > { %v3307_v23 = vpop.f32.mrf.mxu1 }
 0x251   : > { %v4904_v24 = vadd.f32 %v1637_v19, %v1493_v18  ;;  %v3384_v28 = vpop.f32.mrf.mxu0 }
 0x252   : > { %v1425_v8 = vpop.f32.mrf.mxu1 }
 0x253   : > { %v1494_v25 = vadd.f32 %v1425_v8, %v4857_v51  ;;  %v1642_v30 = vpop.f32.mrf.mxu0 }
 0x254   : > { %v3310_v21 = vpop.f32.mrf.mxu1 }
 0x255   : > { %v4907_v29 = vadd.f32 %v1642_v30, %v1494_v25  ;;  %v3387_v36 = vpop.f32.mrf.mxu0 }
 0x256   : > { %v1430_v31 = vpop.f32.mrf.mxu1 }
 0x257   : > { %v1495_v5 = vadd.f32 %v1430_v31, %v4862_v60  ;;  %v1647_v17 = vpop.f32.mrf.mxu0 }
 0x258   : > { %v3313_v34 = vpop.f32.mrf.mxu1 }
 0x259   : > { %v4910_v32 = vadd.f32 %v1647_v17, %v1495_v5  ;;  %v3390_v43 = vpop.f32.mrf.mxu0 }
 0x25a   : > { %v1435_v37 = vpop.f32.mrf.mxu1 }
 0x25b   : > { %v1496_v38 = vadd.f32 %v1435_v37, %v4867_v2  ;;  %v1652_v40 = vpop.f32.mrf.mxu0 }
 0x25c   : > { %v3316_v41 = vpop.f32.mrf.mxu1 }
 0x25d   : > { %v4913_v39 = vadd.f32 %v1652_v40, %v1496_v38  ;;  %v3393_v51 = vpop.f32.mrf.mxu0 }
 0x25e   : > { %v1440_v42 = vpop.f32.mrf.mxu1 }
 0x25f   : > { %v1497_v45 = vadd.f32 %v1440_v42, %v4872_v14  ;;  %v1657_v47 = vpop.f32.mrf.mxu0 }
 0x260   : > { %v3319_v35 = vpop.f32.mrf.mxu1 }
 0x261   : > { %v4916_v48 = vadd.f32 %v1657_v47, %v1497_v45  ;;  %v3396_v60 = vpop.f32.mrf.mxu0 }
 0x262   : > { %v1445_v49 = vpop.f32.mrf.mxu1 }
 0x263   : > { %v1498_v53 = vadd.f32 %v1445_v49, %v4875_v22  ;;  %v1662_v55 = vpop.f32.mrf.mxu0 }
 0x264   : > { %v3322_v56 = vpop.f32.mrf.mxu1 }
 0x265   : > { %v4919_v57 = vadd.f32 %v1662_v55, %v1498_v53  ;;  %v3399_v2 = vpop.f32.mrf.mxu0 }
 0x266   : > { %v1450_v44 = vpop.f32.mrf.mxu1 }
 0x267   : > { %v1499_v59 = vadd.f32 %v1450_v44, %v4878_v27  ;;  %v1667_v61 = vpop.f32.mrf.mxu0 }
 0x268   : > { %v3325_v63 = vpop.f32.mrf.mxu1 }
 0x269   : > { %v4922_v1 = vadd.f32 %v1667_v61, %v1499_v59  ;;  %v3402_v14 = vpop.f32.mrf.mxu0 }
 0x26a   : > { %v1455_v54 = vpop.f32.mrf.mxu1 }
 0x26b   : > { %v1500_v3 = vadd.f32 %v1455_v54, %v4881_v33  ;;  %v1672_v6 = vpop.f32.mrf.mxu0 }
 0x26c   : > { %v3328_v7 = vpop.f32.mrf.mxu1 }
 0x26d   : > { %v4925_v9 = vadd.f32 %v1672_v6, %v1500_v3  ;;  %v3405_v22 = vpop.f32.mrf.mxu0 }
 0x26e   : > { %v1460_v10 = vpop.f32.mrf.mxu1 }
 0x26f   : > { %v1501_v13 = vadd.f32 %v1460_v10, %v4884_v26  ;;  %v1677_v52 = vpop.f32.mrf.mxu0 }
 0x270   : > { %v3331_v12 = vpop.f32.mrf.mxu1 }
 0x271   : > { %v4928_v15 = vadd.f32 %v1677_v52, %v1501_v13  ;;  %v3408_v27 = vpop.f32.mrf.mxu0 }
 0x272   : > { %v1465_v62 = vpop.f32.mrf.mxu1 }
 0x273   : > { %v1502_v20 = vadd.f32 %v1465_v62, %v4886_v46  ;;  %v1682_v11 = vpop.f32.mrf.mxu0 }
 0x274   : > { %v3334_v18 = vpop.f32.mrf.mxu1 }
 0x275   : > { %v4931_v19 = vadd.f32 %v1682_v11, %v1502_v20  ;;  %v3411_v33 = vpop.f32.mrf.mxu0 }
 0x276   : > { %v1470_v23 = vpop.f32.mrf.mxu1 }
 0x277   : > { %v1503_v28 = vadd.f32 %v1470_v23, %v4889_v50  ;;  %v1687_v8 = vpop.f32.mrf.mxu0 }
 0x278   : > { %v3337_v25 = vpop.f32.mrf.mxu1 }
 0x279   : > { %v4934_v30 = vadd.f32 %v1687_v8, %v1503_v28  ;;  %v3414_v26 = vpop.f32.mrf.mxu0 }
 0x27c   : > { %v1834_v21 = vpop.f32.mrf.mxu1  ;;  %v2051_v36 = vpop.f32.mrf.mxu0 }
 0x27e   : > { %v3449_v31 = vpop.f32.mrf.mxu1  ;;  %v3526_v5 = vpop.f32.mrf.mxu0 }
 0x280   : > { %v4936_v17 = vpop.f32.mrf.mxu1  ;;  %v4938_v46 = vpop.f32.mrf.mxu0 }
 0x282   : > { %v3452_v34 = vpop.f32.mrf.mxu1  ;;  %v3529_v43 = vpop.f32.mrf.mxu0 }
 0x284   : > { %v4940_v37 = vpop.f32.mrf.mxu1  ;;  %v4942_v38 = vpop.f32.mrf.mxu0 }
 0x286   : > { %v3455_v50 = vpop.f32.mrf.mxu1  ;;  %v3532_v40 = vpop.f32.mrf.mxu0 }
 0x288   : > { %v1849_v41 = vpop.f32.mrf.mxu1  ;;  %v2066_v51 = vpop.f32.mrf.mxu0 }
 0x28a   : > { %v3458_v42 = vpop.f32.mrf.mxu1  ;;  %v3535_v45 = vpop.f32.mrf.mxu0 }
 0x28c   : > { %v1854_v47 = vpop.f32.mrf.mxu1  ;;  %v2071_v35 = vpop.f32.mrf.mxu0 }
 0x28e   : > { %v3461_v60 = vpop.f32.mrf.mxu1  ;;  %v3538_v49 = vpop.f32.mrf.mxu0 }
 0x28f   : > { %v1923_v49 = vadd.f32 %v1834_v21, %v4892_v58  ;;  %v1927_v58 = vadd.f32 %v1854_v47, %v4904_v24 }
 0x290   : > { %v1859_v53 = vpop.f32.mrf.mxu1  ;;  %v4944_v55 = vpop.f32.mrf.mxu0 }
 0x292   : > { %v3464_v56 = vpop.f32.mrf.mxu1  ;;  %v3541_v2 = vpop.f32.mrf.mxu0 }
 0x293   : > { %v1926_v2 = vadd.f32 %v1849_v41, %v4901_v16 }
 0x294   : > { %v4946_v44 = vpop.f32.mrf.mxu1  ;;  %v4948_v59 = vpop.f32.mrf.mxu0 }
 0x296   : > { %v3467_v61 = vpop.f32.mrf.mxu1  ;;  %v3544_v63 = vpop.f32.mrf.mxu0 }
 0x297   : > { %v2140_v63 = vadd.f32 %v2051_v36, %v1923_v49 }
 0x298   : > { %v4950_v14 = vpop.f32.mrf.mxu1  ;;  %v4952_v54 = vpop.f32.mrf.mxu0 }
 0x29a   : > { %v3470_v3 = vpop.f32.mrf.mxu1  ;;  %v3547_v6 = vpop.f32.mrf.mxu0 }
 0x29b   : > { %v2143_v3 = vadd.f32 %v2066_v51, %v1926_v2  ;;  %v2144_v51 = vadd.f32 %v2071_v35, %v1927_v58 }
 0x29c   : > { %v4954_v7 = vpop.f32.mrf.mxu1  ;;  %v4956_v22 = vpop.f32.mrf.mxu0 }
 0x29e   : > { %v3473_v10 = vpop.f32.mrf.mxu1  ;;  %v3550_v13 = vpop.f32.mrf.mxu0 }
 0x29f   : > { %v1924_v10 = vadd.f32 %v4936_v17, %v4895_v4  ;;  %v1928_v17 = vadd.f32 %v1859_v53, %v4907_v29 }
 0x2a0   : > { %v4958_v52 = vpop.f32.mrf.mxu1  ;;  %v4960_v12 = vpop.f32.mrf.mxu0 }
 0x2a1   : > { %v2141_v36 = vadd.f32 %v4938_v46, %v1924_v10 }
 0x2a2   : > { %v3476_v27 = vpop.f32.mrf.mxu1  ;;  %v3553_v62 = vpop.f32.mrf.mxu0 }
 0x2a4   : > { %v4962_v20 = vpop.f32.mrf.mxu1  ;;  %v4964_v11 = vpop.f32.mrf.mxu0 }
 0x2a6   : > { %v3479_v18 = vpop.f32.mrf.mxu1  ;;  %v3556_v33 = vpop.f32.mrf.mxu0 }
 0x2a7   : > { %v1925_v18 = vadd.f32 %v4940_v37, %v4898_v0  ;;  %v1929_v0 = vadd.f32 %v4946_v44, %v4910_v32  ;;  %v1931_v32 = vadd.f32 %v4954_v7, %v4916_v48  ;;  %v1933_v48 = vadd.f32 %v4962_v20, %v4922_v1 }
 0x2a8   : > { %v4966_v23 = vpop.f32.mrf.mxu1  ;;  %v4968_v28 = vpop.f32.mrf.mxu0 }
 0x2a9   : > { %v2146_v53 = vadd.f32 %v4948_v59, %v1929_v0  ;;  %v2148_v59 = vadd.f32 %v4956_v22, %v1931_v32  ;;  %v2150_v22 = vadd.f32 %v4964_v11, %v1933_v48 }
 0x2aa   : > { %v3482_v8 = vpop.f32.mrf.mxu1  ;;  %v3559_v25 = vpop.f32.mrf.mxu0 }
 0x2ab   : > { %v2142_v8 = vadd.f32 %v4942_v38, %v1925_v18  ;;  %v2145_v25 = vadd.f32 %v4944_v55, %v1928_v17  ;;  %v1930_v55 = vadd.f32 %v4950_v14, %v4913_v39  ;;  %v1932_v39 = vadd.f32 %v4958_v52, %v4919_v57 }
 0x2ac   : > { %v4970_v26 = vpop.f32.mrf.mxu1  ;;  %v4972_v31 = vpop.f32.mrf.mxu0  ;;  %v1934_v57 = vadd.f32 %v4966_v23, %v4925_v9 }
 0x2ad   : > { %v1935_v1 = vadd.f32 %v4970_v26, %v4928_v15 }
 0x2ae   : > { %v3485_v5 = vpop.f32.mrf.mxu1  ;;  %v3562_v34 = vpop.f32.mrf.mxu0 }
 0x2af   : > { %v2152_v11 = vadd.f32 %v4972_v31, %v1935_v1 }
 0x2b0   : > { %v4974_v43 = vpop.f32.mrf.mxu1  ;;  %v4976_v50 = vpop.f32.mrf.mxu0 }
 0x2b1   : > { %v1936_v9 = vadd.f32 %v4974_v43, %v4931_v19 }
 0x2b2   : > { %v3488_v40 = vpop.f32.mrf.mxu1  ;;  %v3565_v42 = vpop.f32.mrf.mxu0 }
 0x2b4   : > { %v4978_v45 = vpop.f32.mrf.mxu1 }
 0x2b5   : > { %v4980_v60 = vpop.f32.mrf.mxu0  ;;  %v1937_v15 = vadd.f32 %v4978_v45, %v4934_v30 }
 0x2b6   : > { %v3491_v56 = vpop.f32.mrf.mxu1 }
 0x2b7   : > { %v3568_v61 = vpop.f32.mrf.mxu0  ;;  %v2147_v56 = vadd.f32 %v4952_v54, %v1930_v55  ;;  %v2149_v54 = vadd.f32 %v4960_v12, %v1932_v39  ;;  %v2151_v12 = vadd.f32 %v4968_v28, %v1934_v57  ;;  %v2153_v28 = vadd.f32 %v4976_v50, %v1936_v9 }
 0x2b9   : > { %v2268_v6 = vpop.f32.mrf.mxu0 }
 0x2ba   : > { %v2357_v13 = vadd.f32 %v2268_v6, %v2140_v63  ;;  %v2283_v27 = vpop.f32.mrf.mxu1 }
 0x2bb   : > { %v2360_v16 = vadd.f32 %v2283_v27, %v2143_v3  ;;  %v3603_v21 = vpop.f32.mrf.mxu0 }
 0x2bc   : > { %2372 = vst [vmem:[%s4988_s29] sm:$0xff] %v2357_v13  ;;  %v3612_v41 = vpop.f32.mrf.mxu1 }
 0x2bd   : > { %2375 = vst [vmem:[%s4988_s29 + $0x18] sm:$0xff] %v2360_v16  ;;  %v2273_v62 = vpop.f32.mrf.mxu0 }
 0x2be   : > { %v2358_v33 = vadd.f32 %v2273_v62, %v2141_v36  ;;  %v2288_v4 = vpop.f32.mrf.mxu1  ;;  %v2154_v62 = vadd.f32 %v4980_v60, %v1937_v15 }
 0x2bf   : > { %v2361_v24 = vadd.f32 %v2288_v4, %v2144_v51  ;;  %v3606_v47 = vpop.f32.mrf.mxu0 }
 0x2c0   : > { %2373 = vst [vmem:[%s4988_s29 + $0x8] sm:$0xff] %v2358_v33  ;;  %v3615_v46 = vpop.f32.mrf.mxu1 }
 0x2c1   : > { %2376 = vst [vmem:[%s4988_s29 + $0x20] sm:$0xff] %v2361_v24  ;;  %v2278_v35 = vpop.f32.mrf.mxu0 }
 0x2c2   : > { %v2359_v5 = vadd.f32 %v2278_v35, %v2142_v8  ;;  %v2293_v34 = vpop.f32.mrf.mxu1 }
 0x2c3   : > { %v2362_v37 = vadd.f32 %v2293_v34, %v2145_v25  ;;  %v3609_v40 = vpop.f32.mrf.mxu0 }
 0x2c4   : > { %2374 = vst [vmem:[%s4988_s29 + $0x10] sm:$0xff] %v2359_v5  ;;  %v3618_v29 = vpop.f32.mrf.mxu1 }
 0x2c5   : > { %2377 = vst [vmem:[%s4988_s29 + $0x28] sm:$0xff] %v2362_v37 }
 0x2c6   : > { %v2298_v38 = vpop.f32.mrf.mxu1 }
 0x2c7   : > { %v2363_v42 = vadd.f32 %v2298_v38, %v2146_v53 }
 0x2c8   : > { %v3621_v49 = vpop.f32.mrf.mxu1 }
 0x2c9   : > { %2378 = vst [vmem:[%s4988_s29 + $0x30] sm:$0xff] %v2363_v42 }
 0x2ca   : > { %v2303_v2 = vpop.f32.mrf.mxu1 }
 0x2cb   : > { %v2364_v44 = vadd.f32 %v2303_v2, %v2147_v56 }
 0x2cc   : > { %v3624_v61 = vpop.f32.mrf.mxu1 }
 0x2cd   : > { %2379 = vst [vmem:[%s4988_s29 + $0x38] sm:$0xff] %v2364_v44 }
 0x2ce   : > { %v2308_v63 = vpop.f32.mrf.mxu1 }
 0x2cf   : > { %v2365_v14 = vadd.f32 %v2308_v63, %v2148_v59 }
 0x2d0   : > { %v3627_v3 = vpop.f32.mrf.mxu1 }
 0x2d1   : > { %2380 = vst [vmem:[%s4988_s29 + $0x40] sm:$0xff] %v2365_v14 }
 0x2d2   : > { %v2313_v6 = vpop.f32.mrf.mxu1 }
 0x2d3   : > { %v2366_v7 = vadd.f32 %v2313_v6, %v2149_v54 }
 0x2d4   : > { %v3630_v10 = vpop.f32.mrf.mxu1 }
 0x2d5   : > { %2381 = vst [vmem:[%s4988_s29 + $0x48] sm:$0xff] %v2366_v7 }
 0x2d6   : > { %v2318_v13 = vpop.f32.mrf.mxu1 }
 0x2d7   : > { %v2367_v52 = vadd.f32 %v2318_v13, %v2150_v22 }
 0x2d8   : > { %v3633_v27 = vpop.f32.mrf.mxu1 }
 0x2d9   : > { %2382 = vst [vmem:[%s4988_s29 + $0x50] sm:$0xff] %v2367_v52 }
 0x2da   : > { %v2323_v58 = vpop.f32.mrf.mxu1 }
 0x2db   : > { %v2368_v20 = vadd.f32 %v2323_v58, %v2151_v12 }
 0x2dc   : > { %v3636_v16 = vpop.f32.mrf.mxu1 }
 0x2dd   : > { %2383 = vst [vmem:[%s4988_s29 + $0x58] sm:$0xff] %v2368_v20 }
 0x2de   : > { %v2328_v21 = vpop.f32.mrf.mxu1 }
 0x2df   : > { %v2369_v23 = vadd.f32 %v2328_v21, %v2152_v11 }
 0x2e0   : > { %v3639_v36 = vpop.f32.mrf.mxu1 }
 0x2e1   : > { %2384 = vst [vmem:[%s4988_s29 + $0x60] sm:$0xff] %v2369_v23 }
 0x2e2   : > { %v2333_v41 = vpop.f32.mrf.mxu1 }
 0x2e3   : > { %v2370_v26 = vadd.f32 %v2333_v41, %v2153_v28 }
 0x2e4   : > { %v3642_v51 = vpop.f32.mrf.mxu1 }
 0x2e5   : > { %2385 = vst [vmem:[%s4988_s29 + $0x68] sm:$0xff] %v2370_v26 }
 0x2e6   : > { %v2338_v31 = vpop.f32.mrf.mxu1 }
 0x2e7   : > { %v2371_v18 = vadd.f32 %v2338_v31, %v2154_v62 }
 0x2e8   : > { %v3645_v33 = vpop.f32.mrf.mxu1 }
 0x2e9   : > { %2386 = vst [vmem:[%s4988_s29 + $0x70] sm:$0xff] %v2371_v18 }
 0x2ea PF: > { %s15_s18 = sadd.s32 1, %s3734_s18  }
 0x2eb   : > { %p12_p4 = scmp.ge.s32.totalorder %s15_s18, 4  }
 0x2ed   :  { %14 = sbr.rel (!%p12_p4) target bundleno = 1 (0x1), region = 78 }

</bundles_post_ra>
